<compile_context>
chip_gen: v6e
topology: v6e:2x2x1
jax: 0.10.0
libtpu: 0.0.40
codegen_flags: <defaults>
</compile_context>

<pallas_src>
import math

import jax
import jax.numpy as jnp
from jax.experimental import pallas as pl
from jax.experimental.pallas import tpu as pltpu  # noqa: F401  (kept for TPU backend import)

# ---- small, ALBERT-consistent config ----------------------------------------
EMB = 16            # embedding_size
HID = 32            # hidden_size
NHEADS = 4          # num_attention_heads
DHEAD = HID // NHEADS
INTER = 64          # intermediate_size
SEQ = 8             # sequence length
BATCH = 2
NUM_LAYERS = 2      # num_hidden_layers (num_hidden_groups=1, inner_group_num=1
                    #  -> one layer's params shared across all layers)
LN_EPS = 1e-12
NEG_BIG = -1e9      # off-(head,batch)-block additive bias for the fused scores

# rows of the packed parameter-vector operand (all padded to width INTER)
_VEC_ROWS = ("emb_b", "bq", "bk", "bv", "bd",
             "ln1_g", "ln1_b", "b1", "b2", "ln2_g", "ln2_b")
_VEC_WIDTH = {name: (INTER if name == "b1" else HID) for name in _VEC_ROWS}


# ---- in-kernel math helpers --------------------------------------------------
def _layernorm(x, g, b, eps):
    mu = jnp.mean(x, axis=-1, keepdims=True)
    var = jnp.mean((x - mu) ** 2, axis=-1, keepdims=True)
    return (x - mu) * jax.lax.rsqrt(var + eps) * g + b


def _gelu_new(x):
    return 0.5 * x * (1.0 + jnp.tanh(math.sqrt(2.0 / math.pi)
                                     * (x + 0.044715 * x * x * x)))


# ---- fused Pallas kernel: embedding mapping + all shared-weight layers ------
def albert_transformer_kernel(x_ref, bias_ref, emb_w_ref,
                              wq_ref, wk_ref, wv_ref, wd_ref,
                              w1_ref, w2_ref, vec_ref, o_ref):
    # x_ref    : (B*S, EMB)          whole batch folded onto the sublane axis
    # bias_ref : (NH*B*S, NH*B*S)    additive score bias: -1e9 off the
    #                                (head, batch) diagonal blocks, and the
    #                                module's additive key mask inside them
    # wd_ref   : (H, H)              un-split attention output projection
    # vec_ref  : (11, INTER)         packed biases / LayerNorm params

    def vec(name):
        i = _VEC_ROWS.index(name)
        w = _VEC_WIDTH[name]
        return vec_ref[i:i + 1, 0:w]        # [1, w], broadcasts over rows

    x = x_ref[...]                          # [B*S, EMB]
    bias = bias_ref[...]                    # [NH*B*S, NH*B*S]

    # weights are VMEM-resident; load once and reuse across the layer loop
    emb_w = emb_w_ref[...]
    wq, wk, wv, wd = wq_ref[...], wk_ref[...], wv_ref[...], wd_ref[...]
    w1, w2 = w1_ref[...], w2_ref[...]
    bq, bk, bv, bd = vec("bq"), vec("bk"), vec("bv"), vec("bd")
    ln1_g, ln1_b = vec("ln1_g"), vec("ln1_b")
    ln2_g, ln2_b = vec("ln2_g"), vec("ln2_b")
    b1, b2 = vec("b1"), vec("b2")

    # embedding_hidden_mapping_in  (one matmul for the whole batch)
    h = jnp.dot(x, emb_w, preferred_element_type=jnp.float32) + vec("emb_b")

    scale = 1.0 / math.sqrt(DHEAD)
    BS = BATCH * SEQ                        # 16 rows in hidden layout

    def to_headmajor(t):
        # [B*S, H] -> [NH*B*S, DHEAD], rows ordered (head, batch, seq)
        return jnp.concatenate(
            [t[:, i * DHEAD:(i + 1) * DHEAD] for i in range(NHEADS)], axis=0)

    def from_headmajor(t):
        # [NH*B*S, DHEAD] -> [B*S, H]   (== permute(0,2,1,3).reshape(B,S,H))
        return jnp.concatenate(
            [t[i * BS:(i + 1) * BS, :] for i in range(NHEADS)], axis=1)

    for _ in range(NUM_LAYERS):             # ALBERT: all layers share weights
        # --- self attention ---
        q = jnp.dot(h, wq, preferred_element_type=jnp.float32) + bq
        k = jnp.dot(h, wk, preferred_element_type=jnp.float32) + bk
        v = jnp.dot(h, wv, preferred_element_type=jnp.float32) + bv

        qh, kh, vh = to_headmajor(q), to_headmajor(k), to_headmajor(v)  # [64,8]

        # one fused score matmul for all heads & the whole batch, block-diag mask
        s = jnp.einsum("rd,cd->rc", qh, kh,
                       preferred_element_type=jnp.float32) * scale       # [64,64]
        s = s + bias
        s = s - jnp.max(s, axis=-1, keepdims=True)
        e = jnp.exp(s)
        p = e / jnp.sum(e, axis=-1, keepdims=True)   # exact division (f32-tight)

        ctx = jnp.dot(p, vh, preferred_element_type=jnp.float32)         # [64,8]
        ctx2d = from_headmajor(ctx)                                       # [16,32]

        # fused output projection: single [B*S,H] x [H,H] dot
        proj = jnp.dot(ctx2d, wd, preferred_element_type=jnp.float32) + bd
        attn_out = _layernorm(h + proj, ln1_g, ln1_b, LN_EPS)

        # --- FFN ---
        f = jnp.dot(attn_out, w1, preferred_element_type=jnp.float32) + b1
        f = _gelu_new(f)
        f = jnp.dot(f, w2, preferred_element_type=jnp.float32) + b2
        h = _layernorm(f + attn_out, ln2_g, ln2_b, LN_EPS)

    o_ref[...] = h


# ---- wrapper -----------------------------------------------------------------
def _pack_vectors(params):
    layer, emb_b = params["layer"], params["emb_b"]
    rows = []
    for name in _VEC_ROWS:
        v = emb_b if name == "emb_b" else layer[name]
        v = v.reshape(-1).astype(jnp.float32)
        rows.append(jnp.pad(v, (0, INTER - v.shape[0])))
    return jnp.stack(rows, axis=0)          # [len(_VEC_ROWS), INTER]


def _build_score_bias(mask_add):
    """[B,S] additive key mask -> [NH*B*S, NH*B*S] fused score bias.

    Rows/cols are ordered (head, batch, seq).  Entries are the module's
    additive mask inside each (head, batch) diagonal block and -1e9 elsewhere,
    so one big softmax over 64 columns reproduces the per-(batch, head)
    softmax over S keys exactly (off-block exp underflows to 0.0 in f32).
    """
    B, S = mask_add.shape
    R = NHEADS * B * S
    r = jnp.arange(R)
    hb = r // S                              # combined (head, batch) id
    kb = (r // S) % B                        # batch id of each key column
    ks = r % S                               # seq position of each key column
    same_block = hb[:, None] == hb[None, :]
    key_mask = mask_add[kb, ks]              # [R]
    return jnp.where(same_block, key_mask[None, :], NEG_BIG).astype(jnp.float32)


def albert_transformer(x_emb, mask_add, params):
    """Full AlbertTransformer forward (single fused pallas_call, no grid).

    mask_add: [B, S] additive attention mask (0 = keep, -1e4 = masked) — the
    module's extended additive mask, broadcast over heads & query positions.
    """
    B, S, E = x_emb.shape
    layer = params["layer"]

    x2d = x_emb.reshape(B * S, E).astype(jnp.float32)
    bias = _build_score_bias(mask_add)
    vec_pack = _pack_vectors(params)

    # No grid: one kernel invocation, every operand is a full-array VMEM block
    # (weights + activations ~40 KB total, trivially resident on v5e/v6e/v7x).
    out2d = pl.pallas_call(
        albert_transformer_kernel,
        out_shape=jax.ShapeDtypeStruct((B * S, HID), jnp.float32),
    )(x2d, bias, params["emb_w"],
      layer["wq"], layer["wk"], layer["wv"], layer["wd"],
      layer["w1"], layer["w2"], vec_pack)

    # TODO(synk): head_mask is treated as None (module default path); per-head
    # masking and output_attentions/output_hidden_states are not implemented.
    return (out2d.reshape(B, S, HID),)


# ---- deterministic parameter init -------------------------------------------
def init_params(key):
    ks = jax.random.split(key, 18)
    n = lambda k, shape, s=0.02: (s * jax.random.normal(k, shape)).astype(jnp.float32)
    layer = dict(
        wq=n(ks[1], (HID, HID)), bq=n(ks[2], (HID,)),
        wk=n(ks[3], (HID, HID)), bk=n(ks[4], (HID,)),
        wv=n(ks[5], (HID, HID)), bv=n(ks[6], (HID,)),
        wd=n(ks[7], (HID, HID)), bd=n(ks[8], (HID,)),
        ln1_g=1.0 + n(ks[9], (HID,)), ln1_b=n(ks[10], (HID,)),
        w1=n(ks[11], (HID, INTER)), b1=n(ks[12], (INTER,)),
        w2=n(ks[13], (INTER, HID)), b2=n(ks[14], (HID,)),
        ln2_g=1.0 + n(ks[15], (HID,)), ln2_b=n(ks[16], (HID,)),
    )
    return dict(emb_w=n(ks[0], (EMB, HID)), emb_b=n(ks[17], (HID,)), layer=layer)


# ---- pure-JAX reference (for correctness check) ------------------------------
def _ref_layer(x, mask_add, p):
    B, S, H = x.shape

    def split(t):
        return t.reshape(B, S, NHEADS, DHEAD).transpose(0, 2, 1, 3)

    q = split(x @ p["wq"] + p["bq"])
    k = split(x @ p["wk"] + p["bk"])
    v = split(x @ p["wv"] + p["bv"])
    scores = jnp.einsum("bhqd,bhkd->bhqk", q, k) / math.sqrt(DHEAD)
    scores = scores + mask_add[:, None, None, :]
    probs = jax.nn.softmax(scores, axis=-1)
    ctx = jnp.einsum("bhqk,bhkd->bhqd", probs, v).transpose(0, 2, 1, 3).reshape(B, S, H)
    proj = ctx @ p["wd"] + p["bd"]
    attn_out = _layernorm(x + proj, p["ln1_g"], p["ln1_b"], LN_EPS)
    ffn = _gelu_new(attn_out @ p["w1"] + p["b1"]) @ p["w2"] + p["b2"]
    return _layernorm(ffn + attn_out, p["ln2_g"], p["ln2_b"], LN_EPS)


def _ref_transformer(x_emb, mask_add, params):
    hidden = x_emb @ params["emb_w"] + params["emb_b"]
    for _ in range(NUM_LAYERS):
        hidden = _ref_layer(hidden, mask_add, params["layer"])
    return hidden


# ---- main --------------------------------------------------------------------
if __name__ == "__main__":
    key = jax.random.PRNGKey(0)
    k_x, k_p = jax.random.split(key)

    x_emb = jax.random.normal(k_x, (BATCH, SEQ, EMB), dtype=jnp.float32)
    # additive attention mask: batch 0 fully visible, batch 1 masks last 2 keys
    mask_add = jnp.zeros((BATCH, SEQ), jnp.float32)
    mask_add = mask_add.at[1, SEQ - 2:].set(-10000.0)

    params = init_params(k_p)

    (out,) = albert_transformer(x_emb, mask_add, params)
    out = jax.block_until_ready(out)

    ref = _ref_transformer(x_emb, mask_add, params)
    assert out.shape == (BATCH, SEQ, HID)
    # exact-division softmax -> f32-tight agreement with the JAX reference
    assert jnp.allclose(out, ref, atol=1e-4, rtol=1e-4), "mismatch vs JAX reference"

    print("KERNEL_OK")
</pallas_src>

<mosaic_0001>
module attributes {stable_mosaic.version = 11 : i64} {
  func.func @albert_transformer_kernel(%arg0: memref<16x16xf32, #tpu.memory_space<vmem>>, %arg1: memref<64x64xf32, #tpu.memory_space<vmem>>, %arg2: memref<16x32xf32, #tpu.memory_space<vmem>>, %arg3: memref<32x32xf32, #tpu.memory_space<vmem>>, %arg4: memref<32x32xf32, #tpu.memory_space<vmem>>, %arg5: memref<32x32xf32, #tpu.memory_space<vmem>>, %arg6: memref<32x32xf32, #tpu.memory_space<vmem>>, %arg7: memref<32x64xf32, #tpu.memory_space<vmem>>, %arg8: memref<64x32xf32, #tpu.memory_space<vmem>>, %arg9: memref<11x64xf32, #tpu.memory_space<vmem>>, %arg10: memref<16x32xf32, #tpu.memory_space<vmem>>) attributes {dimension_semantics = [], scalar_prefetch = 0 : i64, scratch_operands = 0 : i64, tpu.core_type = #tpu.core_type<tc>} {
    %c0 = arith.constant 0 : index
    %c0_0 = arith.constant 0 : index
    %0 = vector.load %arg0[%c0, %c0_0] : memref<16x16xf32, #tpu.memory_space<vmem>>, vector<16x16xf32>
    %c0_1 = arith.constant 0 : index
    %c0_2 = arith.constant 0 : index
    %1 = vector.load %arg1[%c0_1, %c0_2] : memref<64x64xf32, #tpu.memory_space<vmem>>, vector<64x64xf32>
    %c0_3 = arith.constant 0 : index
    %c0_4 = arith.constant 0 : index
    %2 = vector.load %arg2[%c0_3, %c0_4] : memref<16x32xf32, #tpu.memory_space<vmem>>, vector<16x32xf32>
    %c0_5 = arith.constant 0 : index
    %c0_6 = arith.constant 0 : index
    %3 = vector.load %arg3[%c0_5, %c0_6] : memref<32x32xf32, #tpu.memory_space<vmem>>, vector<32x32xf32>
    %c0_7 = arith.constant 0 : index
    %c0_8 = arith.constant 0 : index
    %4 = vector.load %arg4[%c0_7, %c0_8] : memref<32x32xf32, #tpu.memory_space<vmem>>, vector<32x32xf32>
    %c0_9 = arith.constant 0 : index
    %c0_10 = arith.constant 0 : index
    %5 = vector.load %arg5[%c0_9, %c0_10] : memref<32x32xf32, #tpu.memory_space<vmem>>, vector<32x32xf32>
    %c0_11 = arith.constant 0 : index
    %c0_12 = arith.constant 0 : index
    %6 = vector.load %arg6[%c0_11, %c0_12] : memref<32x32xf32, #tpu.memory_space<vmem>>, vector<32x32xf32>
    %c0_13 = arith.constant 0 : index
    %c0_14 = arith.constant 0 : index
    %7 = vector.load %arg7[%c0_13, %c0_14] : memref<32x64xf32, #tpu.memory_space<vmem>>, vector<32x64xf32>
    %c0_15 = arith.constant 0 : index
    %c0_16 = arith.constant 0 : index
    %8 = vector.load %arg8[%c0_15, %c0_16] : memref<64x32xf32, #tpu.memory_space<vmem>>, vector<64x32xf32>
    %c1 = arith.constant 1 : index
    %c0_17 = arith.constant 0 : index
    %9 = vector.load %arg9[%c1, %c0_17] : memref<11x64xf32, #tpu.memory_space<vmem>>, vector<1x32xf32>
    %c2 = arith.constant 2 : index
    %c0_18 = arith.constant 0 : index
    %10 = vector.load %arg9[%c2, %c0_18] : memref<11x64xf32, #tpu.memory_space<vmem>>, vector<1x32xf32>
    %c3 = arith.constant 3 : index
    %c0_19 = arith.constant 0 : index
    %11 = vector.load %arg9[%c3, %c0_19] : memref<11x64xf32, #tpu.memory_space<vmem>>, vector<1x32xf32>
    %c4 = arith.constant 4 : index
    %c0_20 = arith.constant 0 : index
    %12 = vector.load %arg9[%c4, %c0_20] : memref<11x64xf32, #tpu.memory_space<vmem>>, vector<1x32xf32>
    %c5 = arith.constant 5 : index
    %c0_21 = arith.constant 0 : index
    %13 = vector.load %arg9[%c5, %c0_21] : memref<11x64xf32, #tpu.memory_space<vmem>>, vector<1x32xf32>
    %c6 = arith.constant 6 : index
    %c0_22 = arith.constant 0 : index
    %14 = vector.load %arg9[%c6, %c0_22] : memref<11x64xf32, #tpu.memory_space<vmem>>, vector<1x32xf32>
    %c9 = arith.constant 9 : index
    %c0_23 = arith.constant 0 : index
    %15 = vector.load %arg9[%c9, %c0_23] : memref<11x64xf32, #tpu.memory_space<vmem>>, vector<1x32xf32>
    %c10 = arith.constant 10 : index
    %c0_24 = arith.constant 0 : index
    %16 = vector.load %arg9[%c10, %c0_24] : memref<11x64xf32, #tpu.memory_space<vmem>>, vector<1x32xf32>
    %c7 = arith.constant 7 : index
    %c0_25 = arith.constant 0 : index
    %17 = vector.load %arg9[%c7, %c0_25] : memref<11x64xf32, #tpu.memory_space<vmem>>, vector<1x64xf32>
    %c8 = arith.constant 8 : index
    %c0_26 = arith.constant 0 : index
    %18 = vector.load %arg9[%c8, %c0_26] : memref<11x64xf32, #tpu.memory_space<vmem>>, vector<1x32xf32>
    %cst = arith.constant dense<0.000000e+00> : vector<16x32xf32>
    %19 = tpu.matmul %0, %2, %cst {dimension_numbers = #tpu.dot_dimension_numbers<[1], [0], [0], [1], [0, 0, 1, 1], [], []>} : vector<16x16xf32>, vector<16x32xf32>, vector<16x32xf32> -> vector<16x32xf32>
    %c0_27 = arith.constant 0 : index
    %c0_28 = arith.constant 0 : index
    %20 = vector.load %arg9[%c0_27, %c0_28] : memref<11x64xf32, #tpu.memory_space<vmem>>, vector<1x32xf32>
    %21 = vector.broadcast %20 : vector<1x32xf32> to vector<16x32xf32>
    %22 = arith.addf %19, %21 : vector<16x32xf32>
    %cst_29 = arith.constant dense<0.000000e+00> : vector<16x32xf32>
    %23 = tpu.matmul %22, %3, %cst_29 {dimension_numbers = #tpu.dot_dimension_numbers<[1], [0], [0], [1], [0, 0, 1, 1], [], []>} : vector<16x32xf32>, vector<32x32xf32>, vector<16x32xf32> -> vector<16x32xf32>
    %24 = vector.broadcast %9 : vector<1x32xf32> to vector<16x32xf32>
    %25 = arith.addf %23, %24 : vector<16x32xf32>
    %cst_30 = arith.constant dense<0.000000e+00> : vector<16x32xf32>
    %26 = tpu.matmul %22, %4, %cst_30 {dimension_numbers = #tpu.dot_dimension_numbers<[1], [0], [0], [1], [0, 0, 1, 1], [], []>} : vector<16x32xf32>, vector<32x32xf32>, vector<16x32xf32> -> vector<16x32xf32>
    %27 = vector.broadcast %10 : vector<1x32xf32> to vector<16x32xf32>
    %28 = arith.addf %26, %27 : vector<16x32xf32>
    %cst_31 = arith.constant dense<0.000000e+00> : vector<16x32xf32>
    %29 = tpu.matmul %22, %5, %cst_31 {dimension_numbers = #tpu.dot_dimension_numbers<[1], [0], [0], [1], [0, 0, 1, 1], [], []>} : vector<16x32xf32>, vector<32x32xf32>, vector<16x32xf32> -> vector<16x32xf32>
    %30 = vector.broadcast %11 : vector<1x32xf32> to vector<16x32xf32>
    %31 = arith.addf %29, %30 : vector<16x32xf32>
    %32 = vector.extract_strided_slice %25 {offsets = [0, 0], sizes = [16, 8], strides = [1, 1]} : vector<16x32xf32> to vector<16x8xf32>
    %33 = vector.extract_strided_slice %25 {offsets = [0, 8], sizes = [16, 8], strides = [1, 1]} : vector<16x32xf32> to vector<16x8xf32>
    %34 = vector.extract_strided_slice %25 {offsets = [0, 16], sizes = [16, 8], strides = [1, 1]} : vector<16x32xf32> to vector<16x8xf32>
    %35 = vector.extract_strided_slice %25 {offsets = [0, 24], sizes = [16, 8], strides = [1, 1]} : vector<16x32xf32> to vector<16x8xf32>
    %36 = tpu.concatenate %32, %33, %34, %35 in 0 : vector<16x8xf32>, vector<16x8xf32>, vector<16x8xf32>, vector<16x8xf32> -> vector<64x8xf32>
    %37 = vector.extract_strided_slice %28 {offsets = [0, 0], sizes = [16, 8], strides = [1, 1]} : vector<16x32xf32> to vector<16x8xf32>
    %38 = vector.extract_strided_slice %28 {offsets = [0, 8], sizes = [16, 8], strides = [1, 1]} : vector<16x32xf32> to vector<16x8xf32>
    %39 = vector.extract_strided_slice %28 {offsets = [0, 16], sizes = [16, 8], strides = [1, 1]} : vector<16x32xf32> to vector<16x8xf32>
    %40 = vector.extract_strided_slice %28 {offsets = [0, 24], sizes = [16, 8], strides = [1, 1]} : vector<16x32xf32> to vector<16x8xf32>
    %41 = tpu.concatenate %37, %38, %39, %40 in 0 : vector<16x8xf32>, vector<16x8xf32>, vector<16x8xf32>, vector<16x8xf32> -> vector<64x8xf32>
    %42 = vector.extract_strided_slice %31 {offsets = [0, 0], sizes = [16, 8], strides = [1, 1]} : vector<16x32xf32> to vector<16x8xf32>
    %43 = vector.extract_strided_slice %31 {offsets = [0, 8], sizes = [16, 8], strides = [1, 1]} : vector<16x32xf32> to vector<16x8xf32>
    %44 = vector.extract_strided_slice %31 {offsets = [0, 16], sizes = [16, 8], strides = [1, 1]} : vector<16x32xf32> to vector<16x8xf32>
    %45 = vector.extract_strided_slice %31 {offsets = [0, 24], sizes = [16, 8], strides = [1, 1]} : vector<16x32xf32> to vector<16x8xf32>
    %46 = tpu.concatenate %42, %43, %44, %45 in 0 : vector<16x8xf32>, vector<16x8xf32>, vector<16x8xf32>, vector<16x8xf32> -> vector<64x8xf32>
    "tpu.trace_start"() <{level = 10 : i32, message = "rd,cd->rc"}> : () -> ()
    %cst_32 = arith.constant dense<0.000000e+00> : vector<64x64xf32>
    %47 = tpu.matmul %36, %41, %cst_32 {dimension_numbers = #tpu.dot_dimension_numbers<[1], [1], [0], [0], [0, 0, 1, 0], [], []>} : vector<64x8xf32>, vector<64x8xf32>, vector<64x64xf32> -> vector<64x64xf32>
    "tpu.trace_stop"() : () -> ()
    %cst_33 = arith.constant 0.353553385 : f32
    %48 = vector.broadcast %cst_33 : f32 to vector<64x64xf32>
    %49 = arith.mulf %47, %48 : vector<64x64xf32>
    %50 = arith.addf %49, %1 : vector<64x64xf32>
    %cst_34 = arith.constant dense<0xFF800000> : vector<64xf32>
    %51 = vector.multi_reduction <maximumf>, %50, %cst_34 [1] : vector<64x64xf32> to vector<64xf32>
    %52 = vector.shape_cast %51 : vector<64xf32> to vector<64x1xf32>
    %53 = vector.broadcast %52 : vector<64x1xf32> to vector<64x64xf32>
    %54 = arith.subf %50, %53 : vector<64x64xf32>
    %55 = math.exp %54 : vector<64x64xf32>
    %cst_35 = arith.constant dense<0.000000e+00> : vector<64xf32>
    %56 = vector.multi_reduction <add>, %55, %cst_35 [1] : vector<64x64xf32> to vector<64xf32>
    %57 = vector.shape_cast %56 : vector<64xf32> to vector<64x1xf32>
    %58 = vector.broadcast %57 : vector<64x1xf32> to vector<64x64xf32>
    %59 = arith.divf %55, %58 : vector<64x64xf32>
    %cst_36 = arith.constant dense<0.000000e+00> : vector<64x8xf32>
    %60 = tpu.matmul %59, %46, %cst_36 {dimension_numbers = #tpu.dot_dimension_numbers<[1], [0], [0], [1], [0, 0, 1, 1], [], []>} : vector<64x64xf32>, vector<64x8xf32>, vector<64x8xf32> -> vector<64x8xf32>
    %61 = vector.extract_strided_slice %60 {offsets = [0, 0], sizes = [16, 8], strides = [1, 1]} : vector<64x8xf32> to vector<16x8xf32>
    %62 = vector.extract_strided_slice %60 {offsets = [16, 0], sizes = [16, 8], strides = [1, 1]} : vector<64x8xf32> to vector<16x8xf32>
    %63 = vector.extract_strided_slice %60 {offsets = [32, 0], sizes = [16, 8], strides = [1, 1]} : vector<64x8xf32> to vector<16x8xf32>
    %64 = vector.extract_strided_slice %60 {offsets = [48, 0], sizes = [16, 8], strides = [1, 1]} : vector<64x8xf32> to vector<16x8xf32>
    %65 = tpu.concatenate %61, %62, %63, %64 in 1 : vector<16x8xf32>, vector<16x8xf32>, vector<16x8xf32>, vector<16x8xf32> -> vector<16x32xf32>
    %cst_37 = arith.constant dense<0.000000e+00> : vector<16x32xf32>
    %66 = tpu.matmul %65, %6, %cst_37 {dimension_numbers = #tpu.dot_dimension_numbers<[1], [0], [0], [1], [0, 0, 1, 1], [], []>} : vector<16x32xf32>, vector<32x32xf32>, vector<16x32xf32> -> vector<16x32xf32>
    %67 = vector.broadcast %12 : vector<1x32xf32> to vector<16x32xf32>
    %68 = arith.addf %66, %67 : vector<16x32xf32>
    %69 = arith.addf %22, %68 : vector<16x32xf32>
    %cst_38 = arith.constant dense<0.000000e+00> : vector<16xf32>
    %70 = vector.multi_reduction <add>, %69, %cst_38 [1] : vector<16x32xf32> to vector<16xf32>
    %71 = vector.shape_cast %70 : vector<16xf32> to vector<16x1xf32>
    %cst_39 = arith.constant 3.200000e+01 : f32
    %72 = vector.broadcast %cst_39 : f32 to vector<16x1xf32>
    %73 = arith.divf %71, %72 : vector<16x1xf32>
    %74 = vector.broadcast %73 : vector<16x1xf32> to vector<16x32xf32>
    %75 = arith.subf %69, %74 : vector<16x32xf32>
    %76 = arith.mulf %75, %75 : vector<16x32xf32>
    %cst_40 = arith.constant dense<0.000000e+00> : vector<16xf32>
    %77 = vector.multi_reduction <add>, %76, %cst_40 [1] : vector<16x32xf32> to vector<16xf32>
    %78 = vector.shape_cast %77 : vector<16xf32> to vector<16x1xf32>
    %cst_41 = arith.constant 3.200000e+01 : f32
    %79 = vector.broadcast %cst_41 : f32 to vector<16x1xf32>
    %80 = arith.divf %78, %79 : vector<16x1xf32>
    %81 = vector.broadcast %73 : vector<16x1xf32> to vector<16x32xf32>
    %82 = arith.subf %69, %81 : vector<16x32xf32>
    %cst_42 = arith.constant 9.99999996E-13 : f32
    %83 = vector.broadcast %cst_42 : f32 to vector<16x1xf32>
    %84 = arith.addf %80, %83 : vector<16x1xf32>
    %85 = math.rsqrt %84 : vector<16x1xf32>
    %86 = vector.broadcast %85 : vector<16x1xf32> to vector<16x32xf32>
    %87 = arith.mulf %82, %86 : vector<16x32xf32>
    %88 = vector.broadcast %13 : vector<1x32xf32> to vector<16x32xf32>
    %89 = arith.mulf %87, %88 : vector<16x32xf32>
    %90 = vector.broadcast %14 : vector<1x32xf32> to vector<16x32xf32>
    %91 = arith.addf %89, %90 : vector<16x32xf32>
    %cst_43 = arith.constant dense<0.000000e+00> : vector<16x64xf32>
    %92 = tpu.matmul %91, %7, %cst_43 {dimension_numbers = #tpu.dot_dimension_numbers<[1], [0], [0], [1], [0, 0, 1, 1], [], []>} : vector<16x32xf32>, vector<32x64xf32>, vector<16x64xf32> -> vector<16x64xf32>
    %93 = vector.broadcast %17 : vector<1x64xf32> to vector<16x64xf32>
    %94 = arith.addf %92, %93 : vector<16x64xf32>
    %cst_44 = arith.constant 5.000000e-01 : f32
    %95 = vector.broadcast %cst_44 : f32 to vector<16x64xf32>
    %96 = arith.mulf %95, %94 : vector<16x64xf32>
    %cst_45 = arith.constant 4.471500e-02 : f32
    %97 = vector.broadcast %cst_45 : f32 to vector<16x64xf32>
    %98 = arith.mulf %97, %94 : vector<16x64xf32>
    %99 = arith.mulf %98, %94 : vector<16x64xf32>
    %100 = arith.mulf %99, %94 : vector<16x64xf32>
    %101 = arith.addf %94, %100 : vector<16x64xf32>
    %cst_46 = arith.constant 0.797884583 : f32
    %102 = vector.broadcast %cst_46 : f32 to vector<16x64xf32>
    %103 = arith.mulf %102, %101 : vector<16x64xf32>
    %104 = math.tanh %103 : vector<16x64xf32>
    %cst_47 = arith.constant 1.000000e+00 : f32
    %105 = vector.broadcast %cst_47 : f32 to vector<16x64xf32>
    %106 = arith.addf %105, %104 : vector<16x64xf32>
    %107 = arith.mulf %96, %106 : vector<16x64xf32>
    %cst_48 = arith.constant dense<0.000000e+00> : vector<16x32xf32>
    %108 = tpu.matmul %107, %8, %cst_48 {dimension_numbers = #tpu.dot_dimension_numbers<[1], [0], [0], [1], [0, 0, 1, 1], [], []>} : vector<16x64xf32>, vector<64x32xf32>, vector<16x32xf32> -> vector<16x32xf32>
    %109 = vector.broadcast %18 : vector<1x32xf32> to vector<16x32xf32>
    %110 = arith.addf %108, %109 : vector<16x32xf32>
    %111 = arith.addf %110, %91 : vector<16x32xf32>
    %cst_49 = arith.constant dense<0.000000e+00> : vector<16xf32>
    %112 = vector.multi_reduction <add>, %111, %cst_49 [1] : vector<16x32xf32> to vector<16xf32>
    %113 = vector.shape_cast %112 : vector<16xf32> to vector<16x1xf32>
    %cst_50 = arith.constant 3.200000e+01 : f32
    %114 = vector.broadcast %cst_50 : f32 to vector<16x1xf32>
    %115 = arith.divf %113, %114 : vector<16x1xf32>
    %116 = vector.broadcast %115 : vector<16x1xf32> to vector<16x32xf32>
    %117 = arith.subf %111, %116 : vector<16x32xf32>
    %118 = arith.mulf %117, %117 : vector<16x32xf32>
    %cst_51 = arith.constant dense<0.000000e+00> : vector<16xf32>
    %119 = vector.multi_reduction <add>, %118, %cst_51 [1] : vector<16x32xf32> to vector<16xf32>
    %120 = vector.shape_cast %119 : vector<16xf32> to vector<16x1xf32>
    %cst_52 = arith.constant 3.200000e+01 : f32
    %121 = vector.broadcast %cst_52 : f32 to vector<16x1xf32>
    %122 = arith.divf %120, %121 : vector<16x1xf32>
    %123 = vector.broadcast %115 : vector<16x1xf32> to vector<16x32xf32>
    %124 = arith.subf %111, %123 : vector<16x32xf32>
    %cst_53 = arith.constant 9.99999996E-13 : f32
    %125 = vector.broadcast %cst_53 : f32 to vector<16x1xf32>
    %126 = arith.addf %122, %125 : vector<16x1xf32>
    %127 = math.rsqrt %126 : vector<16x1xf32>
    %128 = vector.broadcast %127 : vector<16x1xf32> to vector<16x32xf32>
    %129 = arith.mulf %124, %128 : vector<16x32xf32>
    %130 = vector.broadcast %15 : vector<1x32xf32> to vector<16x32xf32>
    %131 = arith.mulf %129, %130 : vector<16x32xf32>
    %132 = vector.broadcast %16 : vector<1x32xf32> to vector<16x32xf32>
    %133 = arith.addf %131, %132 : vector<16x32xf32>
    %cst_54 = arith.constant dense<0.000000e+00> : vector<16x32xf32>
    %134 = tpu.matmul %133, %3, %cst_54 {dimension_numbers = #tpu.dot_dimension_numbers<[1], [0], [0], [1], [0, 0, 1, 1], [], []>} : vector<16x32xf32>, vector<32x32xf32>, vector<16x32xf32> -> vector<16x32xf32>
    %135 = vector.broadcast %9 : vector<1x32xf32> to vector<16x32xf32>
    %136 = arith.addf %134, %135 : vector<16x32xf32>
    %cst_55 = arith.constant dense<0.000000e+00> : vector<16x32xf32>
    %137 = tpu.matmul %133, %4, %cst_55 {dimension_numbers = #tpu.dot_dimension_numbers<[1], [0], [0], [1], [0, 0, 1, 1], [], []>} : vector<16x32xf32>, vector<32x32xf32>, vector<16x32xf32> -> vector<16x32xf32>
    %138 = vector.broadcast %10 : vector<1x32xf32> to vector<16x32xf32>
    %139 = arith.addf %137, %138 : vector<16x32xf32>
    %cst_56 = arith.constant dense<0.000000e+00> : vector<16x32xf32>
    %140 = tpu.matmul %133, %5, %cst_56 {dimension_numbers = #tpu.dot_dimension_numbers<[1], [0], [0], [1], [0, 0, 1, 1], [], []>} : vector<16x32xf32>, vector<32x32xf32>, vector<16x32xf32> -> vector<16x32xf32>
    %141 = vector.broadcast %11 : vector<1x32xf32> to vector<16x32xf32>
    %142 = arith.addf %140, %141 : vector<16x32xf32>
    %143 = vector.extract_strided_slice %136 {offsets = [0, 0], sizes = [16, 8], strides = [1, 1]} : vector<16x32xf32> to vector<16x8xf32>
    %144 = vector.extract_strided_slice %136 {offsets = [0, 8], sizes = [16, 8], strides = [1, 1]} : vector<16x32xf32> to vector<16x8xf32>
    %145 = vector.extract_strided_slice %136 {offsets = [0, 16], sizes = [16, 8], strides = [1, 1]} : vector<16x32xf32> to vector<16x8xf32>
    %146 = vector.extract_strided_slice %136 {offsets = [0, 24], sizes = [16, 8], strides = [1, 1]} : vector<16x32xf32> to vector<16x8xf32>
    %147 = tpu.concatenate %143, %144, %145, %146 in 0 : vector<16x8xf32>, vector<16x8xf32>, vector<16x8xf32>, vector<16x8xf32> -> vector<64x8xf32>
    %148 = vector.extract_strided_slice %139 {offsets = [0, 0], sizes = [16, 8], strides = [1, 1]} : vector<16x32xf32> to vector<16x8xf32>
    %149 = vector.extract_strided_slice %139 {offsets = [0, 8], sizes = [16, 8], strides = [1, 1]} : vector<16x32xf32> to vector<16x8xf32>
    %150 = vector.extract_strided_slice %139 {offsets = [0, 16], sizes = [16, 8], strides = [1, 1]} : vector<16x32xf32> to vector<16x8xf32>
    %151 = vector.extract_strided_slice %139 {offsets = [0, 24], sizes = [16, 8], strides = [1, 1]} : vector<16x32xf32> to vector<16x8xf32>
    %152 = tpu.concatenate %148, %149, %150, %151 in 0 : vector<16x8xf32>, vector<16x8xf32>, vector<16x8xf32>, vector<16x8xf32> -> vector<64x8xf32>
    %153 = vector.extract_strided_slice %142 {offsets = [0, 0], sizes = [16, 8], strides = [1, 1]} : vector<16x32xf32> to vector<16x8xf32>
    %154 = vector.extract_strided_slice %142 {offsets = [0, 8], sizes = [16, 8], strides = [1, 1]} : vector<16x32xf32> to vector<16x8xf32>
    %155 = vector.extract_strided_slice %142 {offsets = [0, 16], sizes = [16, 8], strides = [1, 1]} : vector<16x32xf32> to vector<16x8xf32>
    %156 = vector.extract_strided_slice %142 {offsets = [0, 24], sizes = [16, 8], strides = [1, 1]} : vector<16x32xf32> to vector<16x8xf32>
    %157 = tpu.concatenate %153, %154, %155, %156 in 0 : vector<16x8xf32>, vector<16x8xf32>, vector<16x8xf32>, vector<16x8xf32> -> vector<64x8xf32>
    "tpu.trace_start"() <{level = 10 : i32, message = "rd,cd->rc"}> : () -> ()
    %cst_57 = arith.constant dense<0.000000e+00> : vector<64x64xf32>
    %158 = tpu.matmul %147, %152, %cst_57 {dimension_numbers = #tpu.dot_dimension_numbers<[1], [1], [0], [0], [0, 0, 1, 0], [], []>} : vector<64x8xf32>, vector<64x8xf32>, vector<64x64xf32> -> vector<64x64xf32>
    "tpu.trace_stop"() : () -> ()
    %cst_58 = arith.constant 0.353553385 : f32
    %159 = vector.broadcast %cst_58 : f32 to vector<64x64xf32>
    %160 = arith.mulf %158, %159 : vector<64x64xf32>
    %161 = arith.addf %160, %1 : vector<64x64xf32>
    %cst_59 = arith.constant dense<0xFF800000> : vector<64xf32>
    %162 = vector.multi_reduction <maximumf>, %161, %cst_59 [1] : vector<64x64xf32> to vector<64xf32>
    %163 = vector.shape_cast %162 : vector<64xf32> to vector<64x1xf32>
    %164 = vector.broadcast %163 : vector<64x1xf32> to vector<64x64xf32>
    %165 = arith.subf %161, %164 : vector<64x64xf32>
    %166 = math.exp %165 : vector<64x64xf32>
    %cst_60 = arith.constant dense<0.000000e+00> : vector<64xf32>
    %167 = vector.multi_reduction <add>, %166, %cst_60 [1] : vector<64x64xf32> to vector<64xf32>
    %168 = vector.shape_cast %167 : vector<64xf32> to vector<64x1xf32>
    %169 = vector.broadcast %168 : vector<64x1xf32> to vector<64x64xf32>
    %170 = arith.divf %166, %169 : vector<64x64xf32>
    %cst_61 = arith.constant dense<0.000000e+00> : vector<64x8xf32>
    %171 = tpu.matmul %170, %157, %cst_61 {dimension_numbers = #tpu.dot_dimension_numbers<[1], [0], [0], [1], [0, 0, 1, 1], [], []>} : vector<64x64xf32>, vector<64x8xf32>, vector<64x8xf32> -> vector<64x8xf32>
    %172 = vector.extract_strided_slice %171 {offsets = [0, 0], sizes = [16, 8], strides = [1, 1]} : vector<64x8xf32> to vector<16x8xf32>
    %173 = vector.extract_strided_slice %171 {offsets = [16, 0], sizes = [16, 8], strides = [1, 1]} : vector<64x8xf32> to vector<16x8xf32>
    %174 = vector.extract_strided_slice %171 {offsets = [32, 0], sizes = [16, 8], strides = [1, 1]} : vector<64x8xf32> to vector<16x8xf32>
    %175 = vector.extract_strided_slice %171 {offsets = [48, 0], sizes = [16, 8], strides = [1, 1]} : vector<64x8xf32> to vector<16x8xf32>
    %176 = tpu.concatenate %172, %173, %174, %175 in 1 : vector<16x8xf32>, vector<16x8xf32>, vector<16x8xf32>, vector<16x8xf32> -> vector<16x32xf32>
    %cst_62 = arith.constant dense<0.000000e+00> : vector<16x32xf32>
    %177 = tpu.matmul %176, %6, %cst_62 {dimension_numbers = #tpu.dot_dimension_numbers<[1], [0], [0], [1], [0, 0, 1, 1], [], []>} : vector<16x32xf32>, vector<32x32xf32>, vector<16x32xf32> -> vector<16x32xf32>
    %178 = vector.broadcast %12 : vector<1x32xf32> to vector<16x32xf32>
    %179 = arith.addf %177, %178 : vector<16x32xf32>
    %180 = arith.addf %133, %179 : vector<16x32xf32>
    %cst_63 = arith.constant dense<0.000000e+00> : vector<16xf32>
    %181 = vector.multi_reduction <add>, %180, %cst_63 [1] : vector<16x32xf32> to vector<16xf32>
    %182 = vector.shape_cast %181 : vector<16xf32> to vector<16x1xf32>
    %cst_64 = arith.constant 3.200000e+01 : f32
    %183 = vector.broadcast %cst_64 : f32 to vector<16x1xf32>
    %184 = arith.divf %182, %183 : vector<16x1xf32>
    %185 = vector.broadcast %184 : vector<16x1xf32> to vector<16x32xf32>
    %186 = arith.subf %180, %185 : vector<16x32xf32>
    %187 = arith.mulf %186, %186 : vector<16x32xf32>
    %cst_65 = arith.constant dense<0.000000e+00> : vector<16xf32>
    %188 = vector.multi_reduction <add>, %187, %cst_65 [1] : vector<16x32xf32> to vector<16xf32>
    %189 = vector.shape_cast %188 : vector<16xf32> to vector<16x1xf32>
    %cst_66 = arith.constant 3.200000e+01 : f32
    %190 = vector.broadcast %cst_66 : f32 to vector<16x1xf32>
    %191 = arith.divf %189, %190 : vector<16x1xf32>
    %192 = vector.broadcast %184 : vector<16x1xf32> to vector<16x32xf32>
    %193 = arith.subf %180, %192 : vector<16x32xf32>
    %cst_67 = arith.constant 9.99999996E-13 : f32
    %194 = vector.broadcast %cst_67 : f32 to vector<16x1xf32>
    %195 = arith.addf %191, %194 : vector<16x1xf32>
    %196 = math.rsqrt %195 : vector<16x1xf32>
    %197 = vector.broadcast %196 : vector<16x1xf32> to vector<16x32xf32>
    %198 = arith.mulf %193, %197 : vector<16x32xf32>
    %199 = vector.broadcast %13 : vector<1x32xf32> to vector<16x32xf32>
    %200 = arith.mulf %198, %199 : vector<16x32xf32>
    %201 = vector.broadcast %14 : vector<1x32xf32> to vector<16x32xf32>
    %202 = arith.addf %200, %201 : vector<16x32xf32>
    %cst_68 = arith.constant dense<0.000000e+00> : vector<16x64xf32>
    %203 = tpu.matmul %202, %7, %cst_68 {dimension_numbers = #tpu.dot_dimension_numbers<[1], [0], [0], [1], [0, 0, 1, 1], [], []>} : vector<16x32xf32>, vector<32x64xf32>, vector<16x64xf32> -> vector<16x64xf32>
    %204 = vector.broadcast %17 : vector<1x64xf32> to vector<16x64xf32>
    %205 = arith.addf %203, %204 : vector<16x64xf32>
    %cst_69 = arith.constant 5.000000e-01 : f32
    %206 = vector.broadcast %cst_69 : f32 to vector<16x64xf32>
    %207 = arith.mulf %206, %205 : vector<16x64xf32>
    %cst_70 = arith.constant 4.471500e-02 : f32
    %208 = vector.broadcast %cst_70 : f32 to vector<16x64xf32>
    %209 = arith.mulf %208, %205 : vector<16x64xf32>
    %210 = arith.mulf %209, %205 : vector<16x64xf32>
    %211 = arith.mulf %210, %205 : vector<16x64xf32>
    %212 = arith.addf %205, %211 : vector<16x64xf32>
    %cst_71 = arith.constant 0.797884583 : f32
    %213 = vector.broadcast %cst_71 : f32 to vector<16x64xf32>
    %214 = arith.mulf %213, %212 : vector<16x64xf32>
    %215 = math.tanh %214 : vector<16x64xf32>
    %cst_72 = arith.constant 1.000000e+00 : f32
    %216 = vector.broadcast %cst_72 : f32 to vector<16x64xf32>
    %217 = arith.addf %216, %215 : vector<16x64xf32>
    %218 = arith.mulf %207, %217 : vector<16x64xf32>
    %cst_73 = arith.constant dense<0.000000e+00> : vector<16x32xf32>
    %219 = tpu.matmul %218, %8, %cst_73 {dimension_numbers = #tpu.dot_dimension_numbers<[1], [0], [0], [1], [0, 0, 1, 1], [], []>} : vector<16x64xf32>, vector<64x32xf32>, vector<16x32xf32> -> vector<16x32xf32>
    %220 = vector.broadcast %18 : vector<1x32xf32> to vector<16x32xf32>
    %221 = arith.addf %219, %220 : vector<16x32xf32>
    %222 = arith.addf %221, %202 : vector<16x32xf32>
    %cst_74 = arith.constant dense<0.000000e+00> : vector<16xf32>
    %223 = vector.multi_reduction <add>, %222, %cst_74 [1] : vector<16x32xf32> to vector<16xf32>
    %224 = vector.shape_cast %223 : vector<16xf32> to vector<16x1xf32>
    %cst_75 = arith.constant 3.200000e+01 : f32
    %225 = vector.broadcast %cst_75 : f32 to vector<16x1xf32>
    %226 = arith.divf %224, %225 : vector<16x1xf32>
    %227 = vector.broadcast %226 : vector<16x1xf32> to vector<16x32xf32>
    %228 = arith.subf %222, %227 : vector<16x32xf32>
    %229 = arith.mulf %228, %228 : vector<16x32xf32>
    %cst_76 = arith.constant dense<0.000000e+00> : vector<16xf32>
    %230 = vector.multi_reduction <add>, %229, %cst_76 [1] : vector<16x32xf32> to vector<16xf32>
    %231 = vector.shape_cast %230 : vector<16xf32> to vector<16x1xf32>
    %cst_77 = arith.constant 3.200000e+01 : f32
    %232 = vector.broadcast %cst_77 : f32 to vector<16x1xf32>
    %233 = arith.divf %231, %232 : vector<16x1xf32>
    %234 = vector.broadcast %226 : vector<16x1xf32> to vector<16x32xf32>
    %235 = arith.subf %222, %234 : vector<16x32xf32>
    %cst_78 = arith.constant 9.99999996E-13 : f32
    %236 = vector.broadcast %cst_78 : f32 to vector<16x1xf32>
    %237 = arith.addf %233, %236 : vector<16x1xf32>
    %238 = math.rsqrt %237 : vector<16x1xf32>
    %239 = vector.broadcast %238 : vector<16x1xf32> to vector<16x32xf32>
    %240 = arith.mulf %235, %239 : vector<16x32xf32>
    %241 = vector.broadcast %15 : vector<1x32xf32> to vector<16x32xf32>
    %242 = arith.mulf %240, %241 : vector<16x32xf32>
    %243 = vector.broadcast %16 : vector<1x32xf32> to vector<16x32xf32>
    %244 = arith.addf %242, %243 : vector<16x32xf32>
    %c0_79 = arith.constant 0 : index
    %c0_80 = arith.constant 0 : index
    %245 = vector.load %arg10[%c0_79, %c0_80] : memref<16x32xf32, #tpu.memory_space<vmem>>, vector<16x32xf32>
    tpu.vector_store %arg10[%c0_79, %c0_80], %244 {strides = array<i32>} : memref<16x32xf32, #tpu.memory_space<vmem>>, vector<16x32xf32>,
    return
  }
}

</mosaic_0001>

<bundles_post_ra>
// kernel: tpu_custom_call.1
= control target key start
LH: loop header
LB: loop body
LE: loop exit
PB: predicated region body
PF: predicated region fallthrough
CT: control target
= control target key end

     0   :  { %15 = vsyncpa [#allocation3], 0  ;;  %s3850_s0 = inlined_call_operand.hbm [shape: f32[16,16], index: 0, kind: input, shape index: {}]   ;;  %s3851_s1 = inlined_call_operand.vmem [shape: f32[64,64], index: 1, kind: input, shape index: {}]   ;;  %s3852_s2 = inlined_call_operand.hbm [shape: f32[16,32], index: 2, kind: input, shape index: {}]   ;;  %s3853_s3 = inlined_call_operand.vmem [shape: f32[32,32], index: 3, kind: input, shape index: {}]   ;;  %s3854_s4 = inlined_call_operand.hbm [shape: f32[32,32], index: 4, kind: input, shape index: {}]   ;;  %s3855_s5 = inlined_call_operand.hbm [shape: f32[32,32], index: 5, kind: input, shape index: {}]   ;;  %s3856_s6 = inlined_call_operand.hbm [shape: f32[32,32], index: 6, kind: input, shape index: {}]   ;;  %s3857_s7 = inlined_call_operand.hbm [shape: f32[32,64], index: 7, kind: input, shape index: {}]   ;;  %s3858_s8 = inlined_call_operand.vmem [shape: f32[64,32], index: 8, kind: input, shape index: {}]   ;;  %s3859_s9 = inlined_call_operand.vmem [shape: f32[11,64], index: 9, kind: input, shape index: {}]   ;;  %s3860_s10 = inlined_call_operand.hbm [shape: f32[16,32], index: 10, kind: output, shape index: {}]  }
   0x1   :  { %16 = vsyncpa [#allocation6], 0 }
   0x2   :  { %17 = vsyncpa [#allocation9], 0 }
   0x3   :  { %18 = vsyncpa [#allocation12], 0 }
   0x4   :  { %19 = vsyncpa [#allocation4], 0  ;;  %s3082_s13 = smov [#allocation5]   ;;  %s3083_s15 = smov [#allocation8]  }
   0x5   :  { %s39_s14 = sshll.u32 %s3082_s13, 4  ;;  %s65_s16 = sshll.u32 %s3083_s15, 4  ;;  %s40_s14 = int_to_ptr.vmem [resolvable:$true] %s39_s14  ;;  %s66_s16 = int_to_ptr.vmem [resolvable:$true] %s65_s16 }
   0x6   :  { %s2940_s17 = scalar_lea.vmem %s40_s14, 256  ;;  %p2945_p1 = scmp.lt.s32.totalorder %s40_s14, %s40_s14 }
   0x7   :  { %p2941_p0 = scmp.ne.s32.totalorder %s40_s14, %s2940_s17  ;;  %p2946_p2 = scmp.lt.s32.totalorder %s2940_s17, %s2940_s17 }
   0x9   :  { %p2947_p3 = por %p2946_p2, %p2945_p1 }
   0xb   :  { %p2948_p4 = pnand %p2947_p3, %p2941_p0 }
   0xd   :  { %2951 = shalt.err (!%p2948_p4)
}
   0xe   :  { %s3084_s18 = smov 128   ;;  %s3085_s19 = smov 8  }
   0xf   :  { %45 = dma.hbm_to_vmem [thread:$0]  %s3852_s2, 256, %s40_s14, [#allocation6], %s3084_s18, %s3084_s18, %s3085_s19  }
  0x10   :  { %s2960_s22 = scalar_lea.vmem %s66_s16, 512  ;;  %p2965_p6 = scmp.lt.s32.totalorder %s66_s16, %s66_s16 }
  0x11   :  { %p2961_p5 = scmp.ne.s32.totalorder %s66_s16, %s2960_s22  ;;  %p2966_p7 = scmp.lt.s32.totalorder %s2960_s22, %s2960_s22 }
  0x13   :  { %p2967_p8 = por %p2966_p7, %p2965_p6 }
  0x15   :  { %p2968_p9 = pnand %p2967_p8, %p2961_p5 }
  0x17   :  { %2971 = shalt.err (!%p2968_p9)
}
  0x18   :  { %71 = dma.hbm_to_vmem [thread:$0]  %s3855_s5, 512, %s66_s16, [#allocation9], %s3084_s18, %s3084_s18, %s3085_s19  }
  0x19   :  { %s3086_s25 = smov [#allocation2]   ;;  %s3087_s27 = smov [#allocation7]  }
  0x1a   :  { %s25_s26 = sshll.u32 %s3086_s25, 4  ;;  %s53_s28 = sshll.u32 %s3087_s27, 4  ;;  %s26_s26 = int_to_ptr.vmem [resolvable:$true] %s25_s26  ;;  %s54_s28 = int_to_ptr.vmem [resolvable:$true] %s53_s28 }
  0x1b   :  { %s2980_s2 = scalar_lea.vmem %s26_s26, 256  ;;  %p2985_p11 = scmp.lt.s32.totalorder %s26_s26, %s26_s26 }
  0x1c   :  { %p2981_p10 = scmp.ne.s32.totalorder %s26_s26, %s2980_s2  ;;  %p2986_p12 = scmp.lt.s32.totalorder %s2980_s2, %s2980_s2 }
  0x1e   :  { %p2987_p13 = por %p2986_p12, %p2985_p11 }
  0x20   :  { %p2988_p0 = pnand %p2987_p13, %p2981_p10 }
  0x22   :  { %2991 = shalt.err (!%p2988_p0)
}
  0x23   :  { %31 = dma.hbm_to_vmem [thread:$0]  %s3850_s0, 256, %s26_s26, [#allocation3], %s3084_s18, %s3084_s18, %s3085_s19  }
  0x24   :  { %s3000_s5 = scalar_lea.vmem %s54_s28, 512  ;;  %p3005_p2 = scmp.lt.s32.totalorder %s54_s28, %s54_s28 }
  0x25   :  { %p3001_p1 = scmp.ne.s32.totalorder %s54_s28, %s3000_s5  ;;  %p3006_p3 = scmp.lt.s32.totalorder %s3000_s5, %s3000_s5 }
  0x27   :  { %p3007_p4 = por %p3006_p3, %p3005_p2 }
  0x29   :  { %p3008_p5 = pnand %p3007_p4, %p3001_p1 }
  0x2b   :  { %3011 = shalt.err (!%p3008_p5)
}
  0x2c   :  { %59 = dma.hbm_to_vmem [thread:$0]  %s3854_s4, 512, %s54_s28, [#allocation6], %s3084_s18, %s3084_s18, %s3085_s19  }
  0x2d   :  { %s3088_s13 = smov [#allocation10]   ;;  %s3089_s15 = smov [#allocation11]  }
  0x2e   :  { %s77_s14 = sshll.u32 %s3088_s13, 4  ;;  %s89_s16 = sshll.u32 %s3089_s15, 4  ;;  %s78_s14 = int_to_ptr.vmem [resolvable:$true] %s77_s14  ;;  %s90_s16 = int_to_ptr.vmem [resolvable:$true] %s89_s16 }
  0x2f   :  { %s3020_s0 = scalar_lea.vmem %s78_s14, 512  ;;  %p3025_p7 = scmp.lt.s32.totalorder %s78_s14, %s78_s14 }
  0x30   :  { %p3021_p6 = scmp.ne.s32.totalorder %s78_s14, %s3020_s0  ;;  %p3026_p8 = scmp.lt.s32.totalorder %s3020_s0, %s3020_s0 }
  0x32   :  { %p3027_p9 = por %p3026_p8, %p3025_p7 }
  0x34   :  { %p3028_p10 = pnand %p3027_p9, %p3021_p6 }
  0x36   :  { %3031 = shalt.err (!%p3028_p10)
}
  0x37   :  { %83 = dma.hbm_to_vmem [thread:$0]  %s3856_s6, 512, %s78_s14, [#allocation9], %s3084_s18, %s3084_s18, %s3085_s19  }
  0x38   :  { %s3040_s4 = scalar_lea.vmem %s90_s16, 512  ;;  %p3045_p12 = scmp.lt.s32.totalorder %s90_s16, %s90_s16 }
  0x39   :  { %p3041_p11 = scmp.ne.s32.totalorder %s90_s16, %s3040_s4  ;;  %p3046_p13 = scmp.lt.s32.totalorder %s3040_s4, %s3040_s4 }
  0x3b   :  { %p3047_p0 = por %p3046_p13, %p3045_p12 }
  0x3d   :  { %p3048_p1 = pnand %p3047_p0, %p3041_p11 }
  0x3f   :  { %3051 = shalt.err (!%p3048_p1)
}
  0x40   :  { %95 = dma.hbm_to_vmem [thread:$0]  %s3857_s7, 512, %s90_s16, [#allocation12], %s3084_s18, %s3084_s18, %s3085_s19  }
  0x41   :  { %3072 = dma.done.wait [#allocation3], 256  }
  0x42   :  { %3073 = vsyncadd [#allocation3], 4294967040 }
  0x43   :  { %3074 = dma.done.wait [#allocation6], 768  }
  0x44   :  { %3075 = vsyncadd [#allocation6], 4294966528 }
  0x45   :  { %3076 = dma.done.wait [#allocation9], 1024  }
  0x46   :  { %3077 = vsyncadd [#allocation9], 4294966272 }
  0x47   :  { %3078 = dma.done.wait [#allocation12], 512  }
  0x48   :  { %3079 = vsyncadd [#allocation12], 4294966784  ;;  %vm173_vm0 = vcmask 130048   ;;  %v129_v0 = vld [vmem:[#allocation5 + $0x8] sm:$0xff]  ;;  %v128_v1 = vld [vmem:[#allocation5] sm:$0xff]  ;;  %vm259_vm1 = vcmask 261120  }
  0x49   :  { %v118_v2 = vld [vmem:[#allocation2] sm:$0xff]  ;;  %2563 = vmatprep.subr.mxu0 %v129_v0  ;;  %v3191_v3 = vld [vmem:[%s3853_s3 + $0x18] sm:$0xff]  ;;  %v119_v4 = vld [vmem:[#allocation2 + $0x8] sm:$0xff]  ;;  %vm547_vm2 = vcmask 64512   ;;  %s3090_s12 = smov 112   ;;  %s3091_s13 = smov 104  }
  0x4a   :  { %2567 = vmatprep.mubr.msk.f32.mxu0 %vm173_vm0, %v118_v2  ;;  %2564 = vmatpush3.msra.mxu0 %v129_v0  ;;  %v3194_v5 = vld [vmem:[#allocation7 + $0x18] sm:$0xff]  ;;  %v3199_v6 = vld [vmem:[%s3853_s3 + $0x10] sm:$0xff]  ;;  %v3213_v8 = vld [vmem:[%s3853_s3 + $0x8] sm:$0xff]  ;;  %s3092_s14 = smov 120   ;;  %vm701_vm3 = vcmask 523264   ;;  %s3094_s29 = smov 24  }
  0x4b   :  { %2570 = vmatprep.subr.mxu1 %v3191_v3  ;;  %2565 = vmatprep.subr.mxu0 %v128_v1  ;;  %v3207_v7 = vld [vmem:[#allocation7 + $0x10] sm:$0xff]  ;;  %v3217_v9 = vld [vmem:[#allocation7 + $0x8] sm:$0xff]  ;;  %v3224_v10 = vld [vmem:[%s3853_s3] sm:$0xff]  ;;  %vm947_vm4 = vcmask 195584  }
  0x4c   :  { %2571 = vmatpush3.msra.mxu1 %v3191_v3  ;;  %2566 = vmatpush3.msra.mxu0 %v128_v1  ;;  %v3228_v11 = vld [vmem:[#allocation7] sm:$0xff]  ;;  %v3232_v12 = vld [vmem:[#allocation8 + $0x18] sm:$0xff]  ;;  %v3247_v18 = vld [vmem:[#allocation8 + $0x10] sm:$0xff] }
  0x4d   :  { %2572 = vmatprep.subr.mxu1 %v3199_v6  ;;  %2568 = vmatmul.mubr.msk.f32.vlgmr.msra.gmra.mxu0 %vm173_vm0, %v119_v4  ;;  %v2330_v14 = vld [vmem:[%s3859_s9] ss:$0 sm:$0xff]  ;;  %v3256_v19 = vld [vmem:[#allocation8 + $0x8] sm:$0xff]  ;;  %v3271_v21 = vld [vmem:[%s3859_s9 + $0x2] ss:$0 sm:$0xff] }
  0x4e   :  { %2581 = vmatprep.subr.mxu0 %v3194_v5  ;;  %2573 = vmatpush3.msra.mxu1 %v3199_v6  ;;  %v3260_v20 = vld [vmem:[#allocation8] sm:$0xff]  ;;  %v3321_v44 = vld [vmem:[%s3851_s1 + $0x8] sm:$0xff]  ;;  %v3334_v54 = vld [vmem:[%s3851_s1 + $0x10] sm:$0xff] }
  0x4f   :  { %2582 = vmatpush3.msra.mxu0 %v3194_v5  ;;  %2574 = vmatprep.subr.mxu1 %v3213_v8  ;;  %v3277_v25 = vld [vmem:[%s3859_s9 + $0x1] ss:$0 sm:$0xff]  ;;  %v3340_v59 = vld [vmem:[%s3851_s1 + $0x18] sm:$0xff] }
  0x50   :  { %2583 = vmatprep.subr.mxu0 %v3207_v7  ;;  %2575 = vmatpush3.msra.mxu1 %v3213_v8  ;;  %v3326_v47 = vld [vmem:[%s3851_s1] sm:$0xff] }
  0x51   :  { %2584 = vmatpush3.msra.mxu0 %v3207_v7  ;;  %2576 = vmatprep.subr.mxu1 %v3224_v10  ;;  %v3346_v62 = vld [vmem:[%s3851_s1 + $0x20] sm:$0xff] }
  0x52   :  { %2585 = vmatprep.subr.mxu0 %v3217_v9  ;;  %2577 = vmatpush3.msra.mxu1 %v3224_v10 }
  0x53   :  { %2586 = vmatpush3.msra.mxu0 %v3217_v9  ;;  %2592 = vmatprep.subr.mxu1 %v3232_v12 }
  0x54   :  { %2587 = vmatprep.subr.mxu0 %v3228_v11 }
  0x55   :  { %2588 = vmatpush3.msra.mxu0 %v3228_v11 }
 0x10d   :  { %v2569_v13 = vpop.f32.mrf.mxu0 }
 0x10e   :  { %v3241_v17 = vadd.f32 %v2569_v13, %v2330_v14  ;;  %v3353_v13 = vld [vmem:[%s3851_s1 + $0x28] sm:$0xff] }
 0x10f   :  { %v246_v15 = vpop.f32.mrf.mxu0 }
 0x110   :  { %v3239_v16 = vadd.f32 %v2330_v14, %v246_v15 }
 0x112   :  { %2578 = vmatprep.mubr.msk.f32.mxu1 %vm259_vm1, %v3239_v16  ;;  %2589 = vmatprep.mubr.msk.f32.mxu0 %vm259_vm1, %v3239_v16 }
 0x113   :  { %2579 = vmatmul.mubr.msk.f32.vlgmr.msra.gmra.mxu1 %vm259_vm1, %v3241_v17  ;;  %2590 = vmatmul.mubr.msk.f32.vlgmr.msra.gmra.mxu0 %vm259_vm1, %v3241_v17 }
 0x114   :  { %2593 = vmatpush3.msra.mxu1 %v3232_v12  ;;  %2600 = vmatprep.mubr.msk.f32.mxu1 %vm259_vm1, %v3239_v16 }
 0x115   :  { %2594 = vmatprep.subr.mxu1 %v3247_v18 }
 0x116   :  { %2595 = vmatpush3.msra.mxu1 %v3247_v18 }
 0x117   :  { %2596 = vmatprep.subr.mxu1 %v3256_v19 }
 0x118   :  { %2597 = vmatpush3.msra.mxu1 %v3256_v19 }
 0x119   :  { %2598 = vmatprep.subr.mxu1 %v3260_v20 }
 0x11a   :  { %2599 = vmatpush3.msra.mxu1 %v3260_v20 }
 0x11b   :  { %2601 = vmatmul.mubr.msk.f32.vlgmr.msra.gmra.mxu1 %vm259_vm1, %v3241_v17 }
 0x1d3   :  { %v2580_v22 = vpop.f32.mrf.mxu1  ;;  %v2591_v23 = vpop.f32.mrf.mxu0 }
 0x1d4   :  { %v417_v24 = vadd.f32 %v2591_v23, %v3271_v21  ;;  %v338_v30 = vadd.f32 %v2580_v22, %v3277_v25 }
 0x1d5   :  { %v332_v26 = vpop.f32.mrf.mxu1  ;;  %v411_v27 = vpop.f32.mrf.mxu0 }
 0x1d6   :  { %v333_v28 = vadd.f32 %v3277_v25, %v332_v26  ;;  %521 = vrot.lane.b32.xlu1 %v417_v24, %s3090_s12  ;;  %525 = vrot.lane.b32.xlu0 %v417_v24, %s3091_s13  ;;  %v412_v29 = vadd.f32 %v3271_v21, %v411_v27  ;;  %v3362_v26 = vld [vmem:[%s3851_s1 + $0x38] sm:$0xff] }
 0x1d8   :  { %2619 = vmatprep.mubr.msk.f32.mxu0 %vm547_vm2, %v333_v28 }
 0x1da   :  { %519 = vrot.lane.b32.xlu1 %v412_v29, %s3090_s12  ;;  %523 = vrot.lane.b32.xlu0 %v412_v29, %s3091_s13 }
 0x1de   :  { %515 = vrot.lane.b32.xlu1 %v412_v29, %s3092_s14  ;;  %517 = vrot.lane.b32.xlu0 %v417_v24, %s3092_s14 }
 0x1e2   :  { %503 = vrot.lane.b32.xlu1 %v338_v30, %s3092_s14  ;;  %501 = vrot.lane.b32.xlu0 %v333_v28, %s3092_s14 }
 0x1e6   :  { %507 = vrot.lane.b32.xlu1 %v338_v30, %s3090_s12  ;;  %505 = vrot.lane.b32.xlu0 %v333_v28, %s3090_s12 }
 0x1ea   :  { %511 = vrot.lane.b32.xlu1 %v338_v30, %s3091_s13  ;;  %509 = vrot.lane.b32.xlu0 %v333_v28, %s3091_s13 }
 0x248   :  { %v526_v31 = vpop.permute.xlu0 %525  ;;  %v522_v32 = vpop.permute.xlu1 %521 }
 0x249   :  { %2603 = vmatprep.subr.msk.mxu0 %vm547_vm2, %v526_v31 }
 0x24a   :  { %2604 = vmatpush3.xpose.msk.msra.mxu0 %vm547_vm2, %v526_v31 }
 0x24c   :  { %v524_v33 = vpop.permute.xlu0 %523  ;;  %v520_v34 = vpop.permute.xlu1 %519 }
 0x24d   :  { %2605 = vmatprep.subr.msk.mxu0 %vm547_vm2, %v524_v33 }
 0x24e   :  { %2606 = vmatpush3.xpose.msk.msra.mxu0 %vm547_vm2, %v524_v33 }
 0x24f   :  { %2607 = vmatprep.subr.msk.mxu0 %vm547_vm2, %v522_v32 }
 0x250   :  { %v518_v35 = vpop.permute.xlu0 %517  ;;  %v516_v36 = vpop.permute.xlu1 %515 }
 0x252   :  { %2608 = vmatpush3.xpose.msk.msra.mxu0 %vm547_vm2, %v522_v32  ;;  %v3370_v32 = vld [vmem:[%s3859_s9 + $0x3] ss:$0 sm:$0xff] }
 0x253   :  { %2609 = vmatprep.subr.msk.mxu0 %vm547_vm2, %v520_v34 }
 0x254   :  { %v502_v37 = vpop.permute.xlu0 %501  ;;  %v504_v38 = vpop.permute.xlu1 %503 }
 0x256   :  { %2610 = vmatpush3.xpose.msk.msra.mxu0 %vm547_vm2, %v520_v34 }
 0x257   :  { %2611 = vmatprep.subr.msk.mxu0 %vm547_vm2, %v518_v35 }
 0x258   :  { %v506_v39 = vpop.permute.xlu0 %505  ;;  %v508_v40 = vpop.permute.xlu1 %507 }
 0x25a   :  { %2612 = vmatpush3.xpose.msk.msra.mxu0 %vm547_vm2, %v518_v35 }
 0x25b   :  { %2613 = vmatprep.subr.msk.mxu0 %vm547_vm2, %v516_v36 }
 0x25c   :  { %v510_v41 = vpop.permute.xlu0 %509  ;;  %v512_v42 = vpop.permute.xlu1 %511 }
 0x25e   :  { %2614 = vmatpush3.xpose.msk.msra.mxu0 %vm547_vm2, %v516_v36 }
 0x25f   :  { %2615 = vmatprep.subr.msk.mxu0 %vm547_vm2, %v417_v24 }
 0x262   :  { %2616 = vmatpush3.xpose.msk.msra.mxu0 %vm547_vm2, %v417_v24 }
 0x263   :  { %2617 = vmatprep.subr.msk.mxu0 %vm547_vm2, %v412_v29 }
 0x266   :  { %2618 = vmatpush3.xpose.msk.msra.mxu0 %vm547_vm2, %v412_v29 }
 0x269   :  { %2620 = vmatmul.mubr.msk.f32.vlgmr.msra.gmra.mxu0 %vm547_vm2, %v338_v30  ;;  %v2602_v30 = vpop.f32.mrf.mxu1 }
 0x26a   :  { %2622 = vmatprep.mubr.msk.f32.mxu0 %vm547_vm2, %v502_v37  ;;  %v3378_v34 = vadd.f32 %v2602_v30, %v3370_v32  ;;  %v3387_v37 = vld [vmem:[%s3851_s1 + $0x30] sm:$0xff]  ;;  %s3093_s1 = smov 16  }
 0x26b   :  { %v490_v31 = vpop.f32.mrf.mxu1 }
 0x26c   :  { %v3373_v33 = vadd.f32 %v3370_v32, %v490_v31 }
 0x26d   :  { %2623 = vmatmul.mubr.msk.f32.gmra.mxu0 %vm547_vm2, %v504_v38 }
 0x26e   :  { %2625 = vmatprep.mubr.msk.f32.mxu0 %vm547_vm2, %v506_v39 }
 0x271   :  { %2626 = vmatmul.mubr.msk.f32.gmra.mxu0 %vm547_vm2, %v508_v40 }
 0x272   :  { %2628 = vmatprep.mubr.msk.f32.mxu0 %vm547_vm2, %v510_v41 }
 0x275   :  { %2629 = vmatmul.mubr.msk.f32.gmra.mxu0 %vm547_vm2, %v512_v42 }
 0x329   :  { %v2621_v43 = vpop.f32.mrf.mxu0 }
 0x32a   :  { %v686_v45 = vmul.f32 0.35355338, %v2621_v43 }
 0x32b   :  { %v646_v46 = vpop.f32.mrf.mxu0 }
 0x32c   :  { %v685_v48 = vmul.f32 0.35355338, %v646_v46  ;;  %v694_v49 = vadd.f32 %v686_v45, %v3321_v44 }
 0x32d   :  { %v2624_v50 = vpop.f32.mrf.mxu0 }
 0x32e   :  { %v705_v51 = vsel %vm701_vm3, %v694_v49, -inf  ;;  %v693_v52 = vadd.f32 %v685_v48, %v3326_v47  ;;  %v688_v55 = vmul.f32 0.35355338, %v2624_v50 }
 0x32f   :  { %706 = vmax.xlane.f32.xlu1 %v705_v51  ;;  %v656_v53 = vpop.f32.mrf.mxu0 }
 0x330   :  { %v687_v56 = vmul.f32 0.35355338, %v656_v53  ;;  %v702_v57 = vsel %vm701_vm3, %v693_v52, -inf  ;;  %v696_v2 = vadd.f32 %v688_v55, %v3340_v59 }
 0x331   :  { %703 = vmax.xlane.f32.xlu0 %v702_v57  ;;  %v2627_v58 = vpop.f32.mrf.mxu0 }
 0x332   :  { %v695_v60 = vadd.f32 %v687_v56, %v3334_v54  ;;  %v690_v63 = vmul.f32 0.35355338, %v2627_v58  ;;  %v711_v22 = vsel %vm701_vm3, %v696_v2, -inf }
 0x333   :  { %v666_v61 = vpop.f32.mrf.mxu0 }
 0x334   :  { %v689_v0 = vmul.f32 0.35355338, %v666_v61  ;;  %v708_v1 = vsel %vm701_vm3, %v695_v60, -inf  ;;  %v698_v24 = vadd.f32 %v690_v63, %v3353_v13 }
 0x335   :  { %709 = vmax.xlane.f32.xlu0 %v708_v1  ;;  %v2630_v4 = vpop.f32.mrf.mxu0 }
 0x336   :  { %v697_v14 = vadd.f32 %v689_v0, %v3346_v62  ;;  %v692_v15 = vmul.f32 0.35355338, %v2630_v4  ;;  %v717_v27 = vsel %vm701_vm3, %v698_v24, -inf }
 0x337   :  { %v676_v35 = vpop.f32.mrf.mxu0 }
 0x338   :  { %v714_v23 = vsel %vm701_vm3, %v697_v14, -inf  ;;  %v700_v28 = vadd.f32 %v692_v15, %v3362_v26  ;;  %v691_v36 = vmul.f32 0.35355338, %v676_v35 }
 0x339   :  { %712 = vmax.xlane.f32.xlu0 %v711_v22  ;;  %715 = vmax.xlane.f32.xlu1 %v714_v23 }
 0x33a   :  { %v723_v29 = vsel %vm701_vm3, %v700_v28, -inf  ;;  %v3390_v38 = vadd.f32 %v691_v36, %v3387_v37 }
 0x33c   :  { %v720_v39 = vsel %vm701_vm3, %v3390_v38, -inf }
 0x33d   :  { %718 = vmax.xlane.f32.xlu0 %v717_v27 }
 0x341   :  { %724 = vmax.xlane.f32.xlu0 %v723_v29 }
 0x34a   :  { %541 = vrot.lane.b32.xlu1 %v3373_v33, %s3091_s13 }
 0x357   :  { %543 = vrot.lane.b32.xlu0 %v3378_v34, %s3091_s13 }
 0x35b   :  { %537 = vrot.lane.b32.xlu0 %v3378_v34, %s3090_s12 }
 0x36e   :  { %721 = vmax.xlane.f32.xlu1 %v720_v39 }
 0x37f   :  { %535 = vrot.lane.b32.xlu1 %v3373_v33, %s3090_s12 }
 0x3b8   :  { %v707_v40 = vpop.xlane.xlu1 %706 }
 0x3b9   :  { %v727_v41 = vsub.f32 %v694_v49, %v707_v40 }
 0x3ba   :  { %v704_v42 = vpop.xlane.xlu0 %703 }
 0x3bb   :  { %v736_v43 = vmul.f32 1.442695, %v727_v41  ;;  %v726_v45 = vsub.f32 %v693_v52, %v704_v42 }
 0x3bd   :  { %2844 = vpow2.f32 %v736_v43  ;;  %v734_v46 = vmul.f32 1.442695, %v726_v45 }
 0x3be   :  { %v710_v48 = vpop.xlane.xlu0 %709 }
 0x3bf   :  { %2846 = vpow2.f32 %v734_v46  ;;  %v728_v50 = vsub.f32 %v695_v60, %v710_v48 }
 0x3c1   :  { %v738_v51 = vmul.f32 1.442695, %v728_v50 }
 0x3c2   :  { %v713_v53 = vpop.xlane.xlu0 %712  ;;  %v716_v55 = vpop.xlane.xlu1 %715 }
 0x3c3   :  { %2848 = vpow2.f32 %v738_v51  ;;  %v729_v56 = vsub.f32 %v696_v2, %v713_v53  ;;  %v730_v57 = vsub.f32 %v697_v14, %v716_v55 }
 0x3c5   :  { %v740_v58 = vmul.f32 1.442695, %v729_v56  ;;  %v742_v61 = vmul.f32 1.442695, %v730_v57 }
 0x3c6   :  { %v719_v63 = vpop.xlane.xlu0 %718 }
 0x3c7   :  { %2850 = vpow2.f32 %v740_v58  ;;  %v731_v0 = vsub.f32 %v698_v24, %v719_v63  ;;  %v542_v24 = vpop.permute.xlu1 %541 }
 0x3c8   :  { %2852 = vpow2.f32 %v742_v61 }
 0x3c9   :  { %v744_v49 = vmul.f32 1.442695, %v731_v0 }
 0x3ca   :  { %v3396_v1 = vpop.eup %2844  ;;  %v725_v52 = vpop.xlane.xlu0 %724 }
 0x3cb   :  { %2854 = vpow2.f32 %v744_v49  ;;  %v733_v4 = vsub.f32 %v700_v28, %v725_v52  ;;  %v753_v60 = vsel %vm701_vm3, %v3396_v1, 0.0 }
 0x3cc   :  { %v2847_v15 = vpop.eup %2846  ;;  %754 = vadd.xlane.f32.xlu0 %v753_v60 }
 0x3cd   :  { %v748_v22 = vmul.f32 1.442695, %v733_v4  ;;  %v750_v2 = vsel %vm701_vm3, %v2847_v15, 0.0 }
 0x3ce   :  { %v544_v14 = vpop.permute.xlu0 %543  ;;  %751 = vadd.xlane.f32.xlu1 %v750_v2 }
 0x3cf   :  { %2856 = vpow2.f32 %v748_v22  ;;  %2631 = vmatprep.subr.mxu1 %v544_v14 }
 0x3d0   :  { %v3401_v23 = vpop.eup %2848  ;;  %2632 = vmatpush3.msra.mxu1 %v544_v14 }
 0x3d1   :  { %2633 = vmatprep.subr.mxu1 %v542_v24  ;;  %v756_v27 = vsel %vm701_vm3, %v3401_v23, 0.0 }
 0x3d2   :  { %2634 = vmatpush3.msra.mxu1 %v542_v24  ;;  %v538_v28 = vpop.permute.xlu0 %537  ;;  %757 = vadd.xlane.f32.xlu1 %v756_v27 }
 0x3d3   :  { %2635 = vmatprep.subr.mxu1 %v538_v28 }
 0x3d4   :  { %v2851_v29 = vpop.eup %2850  ;;  %2636 = vmatpush3.msra.mxu1 %v538_v28 }
 0x3d5   :  { %v2853_v30 = vpop.eup %2852  ;;  %v759_v31 = vsel %vm701_vm3, %v2851_v29, 0.0 }
 0x3d6   :  { %760 = vadd.xlane.f32.xlu0 %v759_v31  ;;  %v762_v35 = vsel %vm701_vm3, %v2853_v30, 0.0 }
 0x3d7   :  { %763 = vadd.xlane.f32.xlu1 %v762_v35 }
 0x3d8   :  { %v2855_v36 = vpop.eup %2854 }
 0x3d9   :  { %v765_v39 = vsel %vm701_vm3, %v2855_v36, 0.0 }
 0x3da   :  { %766 = vadd.xlane.f32.xlu0 %v765_v39 }
 0x3dc   :  { %v3408_v40 = vpop.eup %2856 }
 0x3dd   :  { %v771_v41 = vsel %vm701_vm3, %v3408_v40, 0.0 }
 0x3de   :  { %772 = vadd.xlane.f32.xlu1 %v771_v41 }
 0x3f0   :  { %531 = vrot.lane.b32.xlu0 %v3378_v34, %s3092_s14 }
 0x3f7   :  { %v722_v42 = vpop.xlane.xlu1 %721 }
 0x3f8   :  { %v732_v43 = vsub.f32 %v3390_v38, %v722_v42 }
 0x3fa   :  { %v746_v45 = vmul.f32 1.442695, %v732_v43 }
 0x3fb   :  { %v536_v46 = vpop.permute.xlu1 %535 }
 0x3fc   :  { %2858 = vpow2.f32 %v746_v45  ;;  %2637 = vmatprep.subr.mxu1 %v536_v46 }
 0x3fd   :  { %2638 = vmatpush3.msra.mxu1 %v536_v46 }
 0x409   :  { %v2859_v48 = vpop.eup %2858 }
 0x40a   :  { %v768_v50 = vsel %vm701_vm3, %v2859_v48, 0.0 }
 0x40b   :  { %769 = vadd.xlane.f32.xlu1 %v768_v50 }
 0x41c   :  { %529 = vrot.lane.b32.xlu1 %v3373_v33, %s3092_s14 }
 0x455   :  { %v755_v53 = vpop.xlane.xlu0 %754 }
 0x457   :  { %v752_v51 = vpop.xlane.xlu1 %751 }
 0x458   :  { %2860 = vrcp.f32 %v752_v51 }
 0x459   :  { %2862 = vrcp.f32 %v755_v53 }
 0x45b   :  { %v758_v61 = vpop.xlane.xlu1 %757 }
 0x45c   :  { %2864 = vrcp.f32 %v758_v61 }
 0x45f   :  { %v761_v55 = vpop.xlane.xlu0 %760 }
 0x460   :  { %v764_v63 = vpop.xlane.xlu1 %763  ;;  %2866 = vrcp.f32 %v761_v55 }
 0x461   :  { %2868 = vrcp.f32 %v764_v63 }
 0x463   :  { %v767_v56 = vpop.xlane.xlu0 %766 }
 0x464   :  { %2870 = vrcp.f32 %v767_v56 }
 0x465   :  { %v2861_v57 = vpop.eup %2860 }
 0x466   :  { %v775_v58 = vmul.f32 %v2861_v57, %v2847_v15  ;;  %v2863_v4 = vpop.eup %2862 }
 0x467   :  { %v532_v38 = vpop.permute.xlu0 %531  ;;  %v773_v0 = vpop.xlane.xlu1 %772  ;;  %v777_v15 = vmul.f32 %v2863_v4, %v3396_v1 }
 0x468   :  { %2639 = vmatprep.subr.mxu1 %v532_v38  ;;  %2647 = vmatprep.mubr.msk.f32.mxu1 %vm701_vm3, %v775_v58 }
 0x469   :  { %2640 = vmatpush3.msra.mxu1 %v532_v38  ;;  %v2865_v60 = vpop.eup %2864 }
 0x46a   :  { %v779_v2 = vmul.f32 %v2865_v60, %v3401_v23  ;;  %v3433_v23 = vld [vmem:[#allocation10 + $0x18] sm:$0xff] }
 0x46d   :  { %v2867_v22 = vpop.eup %2866 }
 0x46e   :  { %v2869_v14 = vpop.eup %2868  ;;  %v781_v24 = vmul.f32 %v2867_v22, %v2851_v29  ;;  %v3435_v29 = vld [vmem:[#allocation10 + $0x10] sm:$0xff] }
 0x46f   :  { %v783_v28 = vmul.f32 %v2869_v14, %v2853_v30  ;;  %v3441_v30 = vld [vmem:[#allocation10 + $0x8] sm:$0xff] }
 0x471   :  { %v2871_v27 = vpop.eup %2870 }
 0x494   :  { %v770_v49 = vpop.xlane.xlu1 %769 }
 0x495   :  { %2872 = vrcp.f32 %v770_v49 }
 0x496   :  { %2874 = vrcp.f32 %v773_v0 }
 0x498   :  { %v530_v52 = vpop.permute.xlu1 %529 }
 0x499   :  { %2641 = vmatprep.subr.mxu1 %v530_v52 }
 0x49a   :  { %2642 = vmatpush3.msra.mxu1 %v530_v52  ;;  %v3466_v52 = vld [vmem:[%s3859_s9 + $0x4] ss:$0 sm:$0xff] }
 0x49b   :  { %2643 = vmatprep.subr.mxu1 %v3378_v34 }
 0x49c   :  { %2644 = vmatpush3.msra.mxu1 %v3378_v34  ;;  %v785_v34 = vmul.f32 %v2871_v27, %v2855_v36  ;;  %v3445_v36 = vld [vmem:[#allocation10] sm:$0xff] }
 0x49d   :  { %2645 = vmatprep.subr.mxu1 %v3373_v33 }
 0x49e   :  { %2646 = vmatpush3.msra.mxu1 %v3373_v33 }
 0x49f   :  { %2648 = vmatmul.mubr.msk.f32.vlgmr.msra.gmra.mxu1 %vm701_vm3, %v777_v15  ;;  %2659 = vmatprep.subr.mxu1 %v3433_v23 }
 0x4a0   :  { %2650 = vmatprep.mubr.msk.f32.mxu1 %vm701_vm3, %v779_v2  ;;  %2660 = vmatpush3.msra.mxu1 %v3433_v23 }
 0x4a1   :  { %2661 = vmatprep.subr.mxu1 %v3435_v29 }
 0x4a2   :  { %v2873_v31 = vpop.eup %2872  ;;  %2662 = vmatpush3.msra.mxu1 %v3435_v29 }
 0x4a3   :  { %2651 = vmatmul.mubr.msk.f32.gmra.mxu1 %vm701_vm3, %v781_v24  ;;  %v2875_v1 = vpop.eup %2874  ;;  %v787_v35 = vmul.f32 %v2873_v31, %v2859_v48  ;;  %2663 = vmatprep.subr.mxu1 %v3441_v30 }
 0x4a4   :  { %2653 = vmatprep.mubr.msk.f32.mxu1 %vm701_vm3, %v783_v28  ;;  %v789_v33 = vmul.f32 %v2875_v1, %v3408_v40  ;;  %2664 = vmatpush3.msra.mxu1 %v3441_v30 }
 0x4a5   :  { %2665 = vmatprep.subr.mxu1 %v3445_v36 }
 0x4a6   :  { %2666 = vmatpush3.msra.mxu1 %v3445_v36 }
 0x4a7   :  { %2654 = vmatmul.mubr.msk.f32.gmra.mxu1 %vm701_vm3, %v785_v34 }
 0x4a8   :  { %2656 = vmatprep.mubr.msk.f32.mxu1 %vm701_vm3, %v787_v35 }
 0x4ab   :  { %2657 = vmatmul.mubr.msk.f32.gmra.mxu1 %vm701_vm3, %v789_v33 }
 0x55f   :  { %v2649_v39 = vpop.f32.mrf.mxu1 }
 0x561   :  { %v880_v40 = vpop.f32.mrf.mxu1 }
 0x563   :  { %v2652_v41 = vpop.f32.mrf.mxu1 }
 0x564   :  { %923 = vrot.lane.b32.xlu1 %v2652_v41, %s3085_s19 }
 0x565   :  { %v890_v42 = vpop.f32.mrf.mxu1 }
 0x566   :  { %921 = vrot.lane.b32.xlu0 %v890_v42, %s3085_s19  ;;  %v3476_v42 = vld [vmem:[#allocation11 + $0x18] sm:$0xff] }
 0x567   :  { %v2655_v43 = vpop.f32.mrf.mxu1  ;;  %2670 = vmatprep.subr.mxu1 %v3476_v42 }
 0x568   :  { %931 = vrot.lane.b32.xlu1 %v2655_v43, %s3093_s1  ;;  %v3482_v43 = vld [vmem:[#allocation11 + $0x8] sm:$0xff] }
 0x569   :  { %v900_v45 = vpop.f32.mrf.mxu1 }
 0x56a   :  { %929 = vrot.lane.b32.xlu0 %v900_v45, %s3093_s1  ;;  %v3486_v45 = vld [vmem:[#allocation11] sm:$0xff] }
 0x56b   :  { %v2658_v46 = vpop.f32.mrf.mxu1 }
 0x56c   :  { %939 = vrot.lane.b32.xlu1 %v2658_v46, %s3094_s29 }
 0x56d   :  { %v910_v48 = vpop.f32.mrf.mxu1 }
 0x56e   :  { %937 = vrot.lane.b32.xlu0 %v910_v48, %s3094_s29 }
 0x5d6   :  { %v924_v50 = vpop.permute.xlu1 %923 }
 0x5d7   :  { %v944_v58 = vsel %vm547_vm2, %v2649_v39, %v924_v50 }
 0x5d8   :  { %v922_v51 = vpop.permute.xlu0 %921 }
 0x5d9   :  { %v943_v56 = vsel %vm547_vm2, %v880_v40, %v922_v51 }
 0x5da   :  { %v932_v53 = vpop.permute.xlu1 %931 }
 0x5db   :  { %v946_v63 = vsel %vm173_vm0, %v944_v58, %v932_v53 }
 0x5dc   :  { %v930_v55 = vpop.permute.xlu0 %929 }
 0x5dd   :  { %v945_v38 = vsel %vm173_vm0, %v943_v56, %v930_v55 }
 0x5de   :  { %v940_v57 = vpop.permute.xlu1 %939 }
 0x5df   :  { %v949_v49 = vsel %vm947_vm4, %v946_v63, %v940_v57  ;;  %v3496_v57 = vld [vmem:[%s3859_s9 + $0x5] ss:$0 sm:$0xff] }
 0x5e0   :  { %v938_v61 = vpop.permute.xlu0 %937 }
 0x5e1   :  { %v948_v0 = vsel %vm947_vm4, %v945_v38, %v938_v61  ;;  %v3501_v38 = vld [vmem:[%s3859_s9 + $0x6] ss:$0 sm:$0xff] }
 0x5e2   :  { %2667 = vmatprep.mubr.msk.f32.mxu1 %vm259_vm1, %v948_v0 }
 0x5e3   :  { %2668 = vmatmul.mubr.msk.f32.vlgmr.msra.gmra.mxu1 %vm259_vm1, %v949_v49 }
 0x5e4   :  { %2671 = vmatpush3.msra.mxu1 %v3476_v42 }
 0x6a3   :  { %v2669_v4 = vpop.f32.mrf.mxu1 }
 0x6a4   :  { %v1032_v60 = vadd.f32 %v2669_v4, %v3466_v52 }
 0x6a5   :  { %v1026_v15 = vpop.f32.mrf.mxu1 }
 0x6a6   :  { %v1027_v22 = vadd.f32 %v3466_v52, %v1026_v15  ;;  %v1036_v2 = vadd.f32 %v1032_v60, %v3241_v17  ;;  %v3526_v15 = vld [vmem:[%s3858_s8 + $0x38] sm:$0xff] }
 0x6a7   :  { %2681 = vmatprep.subr.mxu0 %v3526_v15 }
 0x6a8   :  { %v1040_v14 = vsel %vm259_vm1, %v1036_v2, 0.0  ;;  %v1035_v24 = vadd.f32 %v1027_v22, %v3239_v16  ;;  %v3480_v16 = vld [vmem:[#allocation11 + $0x10] sm:$0xff]  ;;  %2682 = vmatpush3.msra.mxu0 %v3526_v15 }
 0x6a9   :  { %1041 = vadd.xlane.f32.xlu1 %v1040_v14  ;;  %2672 = vmatprep.subr.mxu1 %v3480_v16  ;;  %v3561_v22 = vld [vmem:[%s3858_s8 + $0x10] sm:$0xff]  ;;  %v3573_v14 = vld [vmem:[%s3858_s8] sm:$0xff] }
 0x6aa   :  { %v1037_v27 = vsel %vm259_vm1, %v1035_v24, 0.0  ;;  %2673 = vmatpush3.msra.mxu1 %v3480_v16 }
 0x6ab   :  { %1038 = vadd.xlane.f32.xlu0 %v1037_v27  ;;  %2674 = vmatprep.subr.mxu1 %v3482_v43 }
 0x6ac   :  { %2675 = vmatpush3.msra.mxu1 %v3482_v43 }
 0x6ad   :  { %2676 = vmatprep.subr.mxu1 %v3486_v45 }
 0x6ae   :  { %2677 = vmatpush3.msra.mxu1 %v3486_v45 }
 0x6af   :  { %2700 = vmatprep.subr.mxu1 %v3191_v3 }
 0x732   :  { %v1042_v28 = vpop.xlane.xlu1 %1041 }
 0x733   :  { %v1045_v31 = vmul.f32 0.03125, %v1042_v28 }
 0x734   :  { %v1039_v34 = vpop.xlane.xlu0 %1038 }
 0x735   :  { %v1044_v1 = vmul.f32 0.03125, %v1039_v34  ;;  %v1047_v35 = vsub.f32 %v1036_v2, %v1045_v31  ;;  %v3567_v2 = vld [vmem:[%s3858_s8 + $0x8] sm:$0xff] }
 0x737   :  { %v1046_v33 = vsub.f32 %v1035_v24, %v1044_v1  ;;  %v1049_v41 = vmul.f32 %v1047_v35, %v1047_v35  ;;  %v3583_v24 = vld [vmem:[%s3859_s9 + $0x7] ss:$0 sm:$0xff] }
 0x739   :  { %v1048_v39 = vmul.f32 %v1046_v33, %v1046_v33  ;;  %v1053_v17 = vsel %vm259_vm1, %v1049_v41, 0.0 }
 0x73b   :  { %v1050_v40 = vsel %vm259_vm1, %v1048_v39, 0.0 }
 0x73c   :  { %1051 = vadd.xlane.f32.xlu0 %v1050_v40 }
 0x740   :  { %1054 = vadd.xlane.f32.xlu0 %v1053_v17 }
 0x7c5   :  { %v1052_v46 = vpop.xlane.xlu0 %1051 }
 0x7c6   :  { %v1056_v48 = vmul.f32 0.03125, %v1052_v46 }
 0x7c8   :  { %v1058_v50 = vadd.f32 1e-12, %v1056_v48 }
 0x7c9   :  { %v1055_v51 = vpop.xlane.xlu0 %1054 }
 0x7ca   :  { %2876 = vrsqrt.f32 %v1058_v50  ;;  %v1057_v53 = vmul.f32 0.03125, %v1055_v51 }
 0x7cc   :  { %v1059_v55 = vadd.f32 1e-12, %v1057_v53 }
 0x7ce   :  { %2878 = vrsqrt.f32 %v1059_v55 }
 0x7d7   :  { %v2877_v56 = vpop.eup %2876 }
 0x7d8   :  { %v1062_v58 = vmul.f32 %v2877_v56, %v1046_v33 }
 0x7da   :  { %v1068_v61 = vmul.f32 %v3496_v57, %v1062_v58 }
 0x7db   :  { %v2879_v63 = vpop.eup %2878 }
 0x7dc   :  { %v1063_v0 = vmul.f32 %v2879_v63, %v1047_v35  ;;  %v3505_v49 = vadd.f32 %v3501_v38, %v1068_v61 }
 0x7de   :  { %2678 = vmatprep.mubr.msk.f32.mxu1 %vm259_vm1, %v3505_v49  ;;  %v1069_v4 = vmul.f32 %v3496_v57, %v1063_v0 }
 0x7e0   :  { %v3511_v60 = vadd.f32 %v3501_v38, %v1069_v4  ;;  %v3599_v4 = vld [vmem:[%s3859_s9 + $0x8] ss:$0 sm:$0xff] }
 0x7e2   :  { %2679 = vmatmul.mubr.msk.f32.vlgmr.msra.gmra.mxu1 %vm259_vm1, %v3511_v60 }
 0x7e3   :  { %2701 = vmatpush3.msra.mxu1 %v3191_v3  ;;  %v3533_v3 = vld [vmem:[%s3858_s8 + $0x30] sm:$0xff] }
 0x7e4   :  { %2702 = vmatprep.subr.mxu1 %v3199_v6  ;;  %2683 = vmatprep.subr.mxu0 %v3533_v3 }
 0x7e5   :  { %2703 = vmatpush3.msra.mxu1 %v3199_v6  ;;  %2684 = vmatpush3.msra.mxu0 %v3533_v3  ;;  %v3540_v6 = vld [vmem:[%s3858_s8 + $0x28] sm:$0xff] }
 0x7e6   :  { %2704 = vmatprep.subr.mxu1 %v3213_v8  ;;  %2685 = vmatprep.subr.mxu0 %v3540_v6 }
 0x7e7   :  { %2705 = vmatpush3.msra.mxu1 %v3213_v8  ;;  %2686 = vmatpush3.msra.mxu0 %v3540_v6  ;;  %v3547_v8 = vld [vmem:[%s3858_s8 + $0x20] sm:$0xff] }
 0x7e8   :  { %2706 = vmatprep.subr.mxu1 %v3224_v10  ;;  %2687 = vmatprep.subr.mxu0 %v3547_v8 }
 0x7e9   :  { %2707 = vmatpush3.msra.mxu1 %v3224_v10  ;;  %2688 = vmatpush3.msra.mxu0 %v3547_v8  ;;  %v3554_v10 = vld [vmem:[%s3858_s8 + $0x18] sm:$0xff] }
 0x7ea   :  { %2722 = vmatprep.subr.mxu1 %v3232_v12  ;;  %2689 = vmatprep.subr.mxu0 %v3554_v10 }
 0x7eb   :  { %2690 = vmatpush3.msra.mxu0 %v3554_v10 }
 0x7ec   :  { %2691 = vmatprep.subr.mxu0 %v3561_v22 }
 0x7ed   :  { %2692 = vmatpush3.msra.mxu0 %v3561_v22 }
 0x7ee   :  { %2693 = vmatprep.subr.mxu0 %v3567_v2 }
 0x7ef   :  { %2694 = vmatpush3.msra.mxu0 %v3567_v2 }
 0x7f0   :  { %2695 = vmatprep.subr.mxu0 %v3573_v14 }
 0x7f1   :  { %2696 = vmatpush3.msra.mxu0 %v3573_v14 }
 0x7f2   :  { %2711 = vmatprep.subr.mxu0 %v3194_v5 }
 0x8a2   :  { %v2680_v27 = vpop.f32.mrf.mxu1 }
 0x8a3   :  { %v1158_v28 = vadd.f32 %v2680_v27, %v3583_v24 }
 0x8a4   :  { %v1152_v31 = vpop.f32.mrf.mxu1 }
 0x8a5   :  { %v1164_v34 = vmul.f32 0.044715, %v1158_v28  ;;  %v1153_v1 = vadd.f32 %v3583_v24, %v1152_v31  ;;  %v1162_v61 = vmul.f32 0.5, %v1158_v28 }
 0x8a7   :  { %v1166_v35 = vmul.f32 %v1164_v34, %v1158_v28  ;;  %v1163_v33 = vmul.f32 0.044715, %v1153_v1  ;;  %v1161_v56 = vmul.f32 0.5, %v1153_v1 }
 0x8a9   :  { %v1168_v39 = vmul.f32 %v1166_v35, %v1158_v28  ;;  %v1165_v40 = vmul.f32 %v1163_v33, %v1153_v1 }
 0x8ab   :  { %v1170_v41 = vadd.f32 %v1168_v39, %v1158_v28  ;;  %v1167_v17 = vmul.f32 %v1165_v40, %v1153_v1 }
 0x8ad   :  { %v1172_v46 = vmul.f32 0.7978846, %v1170_v41  ;;  %v1169_v48 = vadd.f32 %v1167_v17, %v1153_v1 }
 0x8af   :  { %2880 = vtanh.f32 %v1172_v46  ;;  %v1171_v50 = vmul.f32 0.7978846, %v1169_v48 }
 0x8b1   :  { %2882 = vtanh.f32 %v1171_v50 }
 0x8bc   :  { %v2881_v51 = vpop.eup %2880 }
 0x8bd   :  { %v1176_v55 = vadd.f32 1.0, %v2881_v51 }
 0x8be   :  { %v2883_v53 = vpop.eup %2882 }
 0x8bf   :  { %v1175_v58 = vadd.f32 1.0, %v2883_v53  ;;  %v1178_v0 = vmul.f32 %v1176_v55, %v1162_v61 }
 0x8c1   :  { %v1177_v63 = vmul.f32 %v1175_v58, %v1161_v56 }
 0x8c3   :  { %2697 = vmatprep.mubr.msk.f32.mxu0 %vm701_vm3, %v1177_v63  ;;  %v3612_v63 = vld [vmem:[%s3859_s9 + $0x9] ss:$0 sm:$0xff] }
 0x8c4   :  { %2698 = vmatmul.mubr.msk.f32.vlgmr.msra.gmra.mxu0 %vm701_vm3, %v1178_v0 }
 0x8c5   :  { %2712 = vmatpush3.msra.mxu0 %v3194_v5 }
 0x8c6   :  { %2713 = vmatprep.subr.mxu0 %v3207_v7 }
 0x8c7   :  { %2714 = vmatpush3.msra.mxu0 %v3207_v7 }
 0x8c8   :  { %2715 = vmatprep.subr.mxu0 %v3217_v9 }
 0x8c9   :  { %2716 = vmatpush3.msra.mxu0 %v3217_v9 }
 0x8ca   :  { %2717 = vmatprep.subr.mxu0 %v3228_v11 }
 0x8cb   :  { %2718 = vmatpush3.msra.mxu0 %v3228_v11 }
 0x984   :  { %v2699_v27 = vpop.f32.mrf.mxu0 }
 0x985   :  { %v1261_v5 = vadd.f32 %v2699_v27, %v3599_v4 }
 0x986   :  { %v1255_v28 = vpop.f32.mrf.mxu0 }
 0x987   :  { %v1256_v31 = vadd.f32 %v3599_v4, %v1255_v28  ;;  %v1265_v7 = vadd.f32 %v1261_v5, %v3511_v60  ;;  %v3618_v28 = vld [vmem:[%s3859_s9 + $0xa] ss:$0 sm:$0xff]  ;;  %s3095_s9 = smov [#allocation13]  }
 0x989   :  { %v1269_v34 = vsel %vm259_vm1, %v1265_v7, 0.0  ;;  %v1264_v9 = vadd.f32 %v1256_v31, %v3505_v49 }
 0x98a   :  { %1270 = vadd.xlane.f32.xlu0 %v1269_v34 }
 0x98b   :  { %v1266_v11 = vsel %vm259_vm1, %v1264_v9, 0.0 }
 0x98c   :  { %1267 = vadd.xlane.f32.xlu1 %v1266_v11 }
 0xa13   :  { %v1271_v1 = vpop.xlane.xlu0 %1270 }
 0xa14   :  { %v1273_v35 = vmul.f32 0.03125, %v1271_v1 }
 0xa15   :  { %v1268_v33 = vpop.xlane.xlu1 %1267 }
 0xa16   :  { %v1275_v39 = vsub.f32 %v1265_v7, %v1273_v35  ;;  %v1272_v40 = vmul.f32 0.03125, %v1268_v33 }
 0xa18   :  { %v1274_v41 = vsub.f32 %v1264_v9, %v1272_v40  ;;  %v1277_v17 = vmul.f32 %v1275_v39, %v1275_v39 }
 0xa1a   :  { %v1281_v46 = vsel %vm259_vm1, %v1277_v17, 0.0  ;;  %v1276_v48 = vmul.f32 %v1274_v41, %v1274_v41 }
 0xa1b   :  { %1282 = vadd.xlane.f32.xlu0 %v1281_v46 }
 0xa1c   :  { %v1278_v60 = vsel %vm259_vm1, %v1276_v48, 0.0 }
 0xa1d   :  { %1279 = vadd.xlane.f32.xlu1 %v1278_v60 }
 0xaa4   :  { %v1283_v50 = vpop.xlane.xlu0 %1282 }
 0xaa5   :  { %v1285_v49 = vmul.f32 0.03125, %v1283_v50 }
 0xaa6   :  { %v1280_v51 = vpop.xlane.xlu1 %1279 }
 0xaa7   :  { %v1287_v53 = vadd.f32 1e-12, %v1285_v49  ;;  %v1284_v55 = vmul.f32 0.03125, %v1280_v51 }
 0xaa9   :  { %2884 = vrsqrt.f32 %v1287_v53  ;;  %v1286_v56 = vadd.f32 1e-12, %v1284_v55 }
 0xaab   :  { %2886 = vrsqrt.f32 %v1286_v56 }
 0xab6   :  { %v2885_v58 = vpop.eup %2884 }
 0xab7   :  { %v1291_v61 = vmul.f32 %v2885_v58, %v1275_v39 }
 0xab8   :  { %v2887_v0 = vpop.eup %2886 }
 0xab9   :  { %v1290_v27 = vmul.f32 %v2887_v0, %v1274_v41  ;;  %v1297_v5 = vmul.f32 %v3612_v63, %v1291_v61 }
 0xabb   :  { %v1296_v31 = vmul.f32 %v3612_v63, %v1290_v27  ;;  %v3625_v34 = vadd.f32 %v3618_v28, %v1297_v5 }
 0xabd   :  { %v3622_v7 = vadd.f32 %v3618_v28, %v1296_v31 }
 0xabf   :  { %2708 = vmatprep.mubr.msk.f32.mxu1 %vm259_vm1, %v3622_v7  ;;  %2719 = vmatprep.mubr.msk.f32.mxu0 %vm259_vm1, %v3622_v7 }
 0xac0   :  { %2709 = vmatmul.mubr.msk.f32.vlgmr.msra.gmra.mxu1 %vm259_vm1, %v3625_v34  ;;  %2720 = vmatmul.mubr.msk.f32.vlgmr.msra.gmra.mxu0 %vm259_vm1, %v3625_v34 }
 0xac1   :  { %2723 = vmatpush3.msra.mxu1 %v3232_v12  ;;  %2730 = vmatprep.mubr.msk.f32.mxu1 %vm259_vm1, %v3622_v7 }
 0xac2   :  { %2724 = vmatprep.subr.mxu1 %v3247_v18 }
 0xac3   :  { %2725 = vmatpush3.msra.mxu1 %v3247_v18 }
 0xac4   :  { %2726 = vmatprep.subr.mxu1 %v3256_v19 }
 0xac5   :  { %2727 = vmatpush3.msra.mxu1 %v3256_v19 }
 0xac6   :  { %2728 = vmatprep.subr.mxu1 %v3260_v20 }
 0xac7   :  { %2729 = vmatpush3.msra.mxu1 %v3260_v20 }
 0xac8   :  { %2731 = vmatmul.mubr.msk.f32.vlgmr.msra.gmra.mxu1 %vm259_vm1, %v3625_v34 }
 0xb80   :  { %v2710_v9 = vpop.f32.mrf.mxu1  ;;  %v2721_v12 = vpop.f32.mrf.mxu0 }
 0xb81   :  { %v1457_v11 = vadd.f32 %v2721_v12, %v3271_v21  ;;  %v1382_v19 = vadd.f32 %v2710_v9, %v3277_v25 }
 0xb82   :  { %v1376_v1 = vpop.f32.mrf.mxu1  ;;  %v1451_v35 = vpop.f32.mrf.mxu0 }
 0xb83   :  { %v1377_v33 = vadd.f32 %v3277_v25, %v1376_v1  ;;  %v1452_v18 = vadd.f32 %v3271_v21, %v1451_v35  ;;  %1561 = vrot.lane.b32.xlu1 %v1457_v11, %s3091_s13 }
 0xb85   :  { %1559 = vrot.lane.b32.xlu0 %v1452_v18, %s3091_s13  ;;  %2749 = vmatprep.mubr.msk.f32.mxu0 %vm547_vm2, %v1377_v33 }
 0xb87   :  { %1557 = vrot.lane.b32.xlu1 %v1457_v11, %s3090_s12 }
 0xb89   :  { %1553 = vrot.lane.b32.xlu0 %v1457_v11, %s3092_s14 }
 0xb8b   :  { %1555 = vrot.lane.b32.xlu1 %v1452_v18, %s3090_s12 }
 0xb8d   :  { %1537 = vrot.lane.b32.xlu0 %v1377_v33, %s3092_s14 }
 0xb8f   :  { %1551 = vrot.lane.b32.xlu1 %v1452_v18, %s3092_s14 }
 0xb91   :  { %1541 = vrot.lane.b32.xlu0 %v1377_v33, %s3090_s12 }
 0xb93   :  { %1539 = vrot.lane.b32.xlu1 %v1382_v19, %s3092_s14 }
 0xb95   :  { %1545 = vrot.lane.b32.xlu0 %v1377_v33, %s3091_s13 }
 0xb97   :  { %1543 = vrot.lane.b32.xlu1 %v1382_v19, %s3090_s12 }
 0xb9b   :  { %1547 = vrot.lane.b32.xlu1 %v1382_v19, %s3091_s13 }
 0xbf5   :  { %v1562_v20 = vpop.permute.xlu1 %1561 }
 0xbf6   :  { %2733 = vmatprep.subr.msk.mxu0 %vm547_vm2, %v1562_v20 }
 0xbf7   :  { %2734 = vmatpush3.xpose.msk.msra.mxu0 %vm547_vm2, %v1562_v20  ;;  %v1560_v21 = vpop.permute.xlu0 %1559 }
 0xbf8   :  { %2735 = vmatprep.subr.msk.mxu0 %vm547_vm2, %v1560_v21 }
 0xbf9   :  { %v1558_v39 = vpop.permute.xlu1 %1557 }
 0xbfb   :  { %2736 = vmatpush3.xpose.msk.msra.mxu0 %vm547_vm2, %v1560_v21  ;;  %v1554_v40 = vpop.permute.xlu0 %1553 }
 0xbfc   :  { %2737 = vmatprep.subr.msk.mxu0 %vm547_vm2, %v1558_v39 }
 0xbfd   :  { %v1556_v25 = vpop.permute.xlu1 %1555 }
 0xbff   :  { %2738 = vmatpush3.xpose.msk.msra.mxu0 %vm547_vm2, %v1558_v39  ;;  %v1538_v17 = vpop.permute.xlu0 %1537 }
 0xc00   :  { %2739 = vmatprep.subr.msk.mxu0 %vm547_vm2, %v1556_v25 }
 0xc01   :  { %v1552_v41 = vpop.permute.xlu1 %1551 }
 0xc03   :  { %2740 = vmatpush3.xpose.msk.msra.mxu0 %vm547_vm2, %v1556_v25  ;;  %v1542_v48 = vpop.permute.xlu0 %1541 }
 0xc04   :  { %2741 = vmatprep.subr.msk.mxu0 %vm547_vm2, %v1554_v40 }
 0xc05   :  { %v1540_v46 = vpop.permute.xlu1 %1539 }
 0xc07   :  { %2742 = vmatpush3.xpose.msk.msra.mxu0 %vm547_vm2, %v1554_v40  ;;  %v1546_v50 = vpop.permute.xlu0 %1545 }
 0xc08   :  { %2743 = vmatprep.subr.msk.mxu0 %vm547_vm2, %v1552_v41 }
 0xc09   :  { %v1544_v60 = vpop.permute.xlu1 %1543 }
 0xc0b   :  { %2744 = vmatpush3.xpose.msk.msra.mxu0 %vm547_vm2, %v1552_v41 }
 0xc0c   :  { %2745 = vmatprep.subr.msk.mxu0 %vm547_vm2, %v1457_v11 }
 0xc0f   :  { %2746 = vmatpush3.xpose.msk.msra.mxu0 %vm547_vm2, %v1457_v11 }
 0xc10   :  { %2747 = vmatprep.subr.msk.mxu0 %vm547_vm2, %v1452_v18 }
 0xc13   :  { %2748 = vmatpush3.xpose.msk.msra.mxu0 %vm547_vm2, %v1452_v18  ;;  %v2732_v18 = vpop.f32.mrf.mxu1 }
 0xc14   :  { %2811 = vmatprep.subr.mxu0 %v3526_v15 }
 0xc16   :  { %2750 = vmatmul.mubr.msk.f32.vlgmr.msra.gmra.mxu0 %vm547_vm2, %v1382_v19  ;;  %v1526_v19 = vpop.f32.mrf.mxu1 }
 0xc17   :  { %2752 = vmatprep.mubr.msk.f32.mxu0 %vm547_vm2, %v1538_v17  ;;  %2812 = vmatpush3.msra.mxu0 %v3526_v15  ;;  %v1548_v15 = vpop.permute.xlu1 %1547 }
 0xc18   :  { %2813 = vmatprep.subr.mxu0 %v3533_v3 }
 0xc19   :  { %2814 = vmatpush3.msra.mxu0 %v3533_v3 }
 0xc1a   :  { %2753 = vmatmul.mubr.msk.f32.gmra.mxu0 %vm547_vm2, %v1540_v46  ;;  %2815 = vmatprep.subr.mxu0 %v3540_v6 }
 0xc1b   :  { %2755 = vmatprep.mubr.msk.f32.mxu0 %vm547_vm2, %v1542_v48  ;;  %2816 = vmatpush3.msra.mxu0 %v3540_v6 }
 0xc1c   :  { %2817 = vmatprep.subr.mxu0 %v3547_v8 }
 0xc1d   :  { %2818 = vmatpush3.msra.mxu0 %v3547_v8 }
 0xc1e   :  { %2756 = vmatmul.mubr.msk.f32.gmra.mxu0 %vm547_vm2, %v1544_v60  ;;  %2819 = vmatprep.subr.mxu0 %v3554_v10 }
 0xc1f   :  { %2758 = vmatprep.mubr.msk.f32.mxu0 %vm547_vm2, %v1546_v50  ;;  %2820 = vmatpush3.msra.mxu0 %v3554_v10 }
 0xc20   :  { %2821 = vmatprep.subr.mxu0 %v3561_v22 }
 0xc21   :  { %2822 = vmatpush3.msra.mxu0 %v3561_v22 }
 0xc22   :  { %2759 = vmatmul.mubr.msk.f32.gmra.mxu0 %vm547_vm2, %v1548_v15  ;;  %2823 = vmatprep.subr.mxu0 %v3567_v2 }
 0xc23   :  { %2824 = vmatpush3.msra.mxu0 %v3567_v2 }
 0xc24   :  { %2825 = vmatprep.subr.mxu0 %v3573_v14 }
 0xc25   :  { %2826 = vmatpush3.msra.mxu0 %v3573_v14 }
 0xcd6   :  { %v2751_v3 = vpop.f32.mrf.mxu0 }
 0xcd7   :  { %v1721_v6 = vmul.f32 0.35355338, %v2751_v3 }
 0xcd8   :  { %v1681_v8 = vpop.f32.mrf.mxu0 }
 0xcd9   :  { %v1720_v49 = vmul.f32 0.35355338, %v1681_v8  ;;  %v1729_v10 = vadd.f32 %v1721_v6, %v3321_v44 }
 0xcda   :  { %v2754_v51 = vpop.f32.mrf.mxu0 }
 0xcdb   :  { %v1739_v53 = vsel %vm701_vm3, %v1729_v10, -inf  ;;  %v1728_v22 = vadd.f32 %v1720_v49, %v3326_v47  ;;  %v1723_v56 = vmul.f32 0.35355338, %v2754_v51 }
 0xcdc   :  { %1740 = vmax.xlane.f32.xlu1 %v1739_v53  ;;  %v1691_v55 = vpop.f32.mrf.mxu0 }
 0xcdd   :  { %v1722_v58 = vmul.f32 0.35355338, %v1691_v55  ;;  %v1736_v2 = vsel %vm701_vm3, %v1728_v22, -inf  ;;  %v1731_v31 = vadd.f32 %v1723_v56, %v3340_v59 }
 0xcde   :  { %1737 = vmax.xlane.f32.xlu0 %v1736_v2  ;;  %v2757_v61 = vpop.f32.mrf.mxu0 }
 0xcdf   :  { %v1730_v14 = vadd.f32 %v1722_v58, %v3334_v54  ;;  %v1725_v27 = vmul.f32 0.35355338, %v2757_v61  ;;  %v1745_v11 = vsel %vm701_vm3, %v1731_v31, -inf }
 0xce0   :  { %v1701_v0 = vpop.f32.mrf.mxu0 }
 0xce1   :  { %v1724_v5 = vmul.f32 0.35355338, %v1701_v0  ;;  %v1742_v44 = vsel %vm701_vm3, %v1730_v14, -inf  ;;  %v1733_v35 = vadd.f32 %v1725_v27, %v3353_v13  ;;  %v3722_v13 = vadd.f32 %v2732_v18, %v3370_v32 }
 0xce2   :  { %1743 = vmax.xlane.f32.xlu0 %v1742_v44  ;;  %v2760_v9 = vpop.f32.mrf.mxu0 }
 0xce3   :  { %v1732_v47 = vadd.f32 %v1724_v5, %v3346_v62  ;;  %v1727_v12 = vmul.f32 0.35355338, %v2760_v9  ;;  %v1751_v54 = vsel %vm701_vm3, %v1733_v35, -inf  ;;  %v3717_v62 = vadd.f32 %v3370_v32, %v1526_v19 }
 0xce5   :  { %v1748_v1 = vsel %vm701_vm3, %v1732_v47, -inf  ;;  %v1735_v33 = vadd.f32 %v1727_v12, %v3362_v26  ;;  %v1711_v26 = vpop.f32.mrf.mxu0 }
 0xce6   :  { %1746 = vmax.xlane.f32.xlu0 %v1745_v11  ;;  %1749 = vmax.xlane.f32.xlu1 %v1748_v1  ;;  %v1726_v20 = vmul.f32 0.35355338, %v1711_v26 }
 0xce7   :  { %v1757_v59 = vsel %vm701_vm3, %v1735_v33, -inf }
 0xce8   :  { %v3729_v21 = vadd.f32 %v1726_v20, %v3387_v37 }
 0xcea   :  { %1752 = vmax.xlane.f32.xlu0 %v1751_v54  ;;  %v1754_v39 = vsel %vm701_vm3, %v3729_v21, -inf }
 0xcee   :  { %1758 = vmax.xlane.f32.xlu0 %v1757_v59 }
 0xcf7   :  { %1577 = vrot.lane.b32.xlu1 %v3717_v62, %s3091_s13 }
 0xd04   :  { %1579 = vrot.lane.b32.xlu0 %v3722_v13, %s3091_s13 }
 0xd08   :  { %1573 = vrot.lane.b32.xlu0 %v3722_v13, %s3090_s12 }
 0xd1b   :  { %1755 = vmax.xlane.f32.xlu1 %v1754_v39 }
 0xd2c   :  { %1571 = vrot.lane.b32.xlu1 %v3717_v62, %s3090_s12  ;;  %s2315_s12 = sshll.u32 %s3095_s9, 4  ;;  %s2316_s12 = int_to_ptr.vmem [resolvable:$true] %s2315_s12 }
 0xd2d   :  { %s3052_s13 = scalar_lea.vmem %s2316_s12, 256  ;;  %p3057_p3 = scmp.lt.s32.totalorder %s2316_s12, %s2316_s12 }
 0xd2e   :  { %p3053_p2 = scmp.ne.s32.totalorder %s2316_s12, %s3052_s13  ;;  %p3058_p4 = scmp.lt.s32.totalorder %s3052_s13, %s3052_s13 }
 0xd30   :  { %p3059_p5 = por %p3058_p4, %p3057_p3 }
 0xd32   :  { %p3060_p6 = pnand %p3059_p5, %p3053_p2 }
 0xd65   :  { %v1741_v32 = vpop.xlane.xlu1 %1740 }
 0xd66   :  { %v1761_v25 = vsub.f32 %v1729_v10, %v1741_v32 }
 0xd67   :  { %v1738_v40 = vpop.xlane.xlu0 %1737 }
 0xd68   :  { %v1770_v41 = vmul.f32 1.442695, %v1761_v25  ;;  %v1760_v17 = vsub.f32 %v1728_v22, %v1738_v40 }
 0xd6a   :  { %2888 = vpow2.f32 %v1770_v41  ;;  %v1768_v46 = vmul.f32 1.442695, %v1760_v17 }
 0xd6b   :  { %v1744_v48 = vpop.xlane.xlu0 %1743 }
 0xd6c   :  { %2890 = vpow2.f32 %v1768_v46  ;;  %v1762_v60 = vsub.f32 %v1730_v14, %v1744_v48 }
 0xd6e   :  { %v1772_v50 = vmul.f32 1.442695, %v1762_v60 }
 0xd6f   :  { %v1747_v37 = vpop.xlane.xlu0 %1746  ;;  %v1750_v15 = vpop.xlane.xlu1 %1749 }
 0xd70   :  { %2892 = vpow2.f32 %v1772_v50  ;;  %v1763_v3 = vsub.f32 %v1731_v31, %v1747_v37  ;;  %v1764_v6 = vsub.f32 %v1732_v47, %v1750_v15 }
 0xd72   :  { %v1774_v8 = vmul.f32 1.442695, %v1763_v3  ;;  %v1776_v49 = vmul.f32 1.442695, %v1764_v6 }
 0xd73   :  { %v1753_v51 = vpop.xlane.xlu0 %1752  ;;  %v1578_v5 = vpop.permute.xlu1 %1577 }
 0xd74   :  { %2894 = vpow2.f32 %v1774_v8  ;;  %v1765_v53 = vsub.f32 %v1733_v35, %v1753_v51 }
 0xd75   :  { %2896 = vpow2.f32 %v1776_v49 }
 0xd76   :  { %v1778_v10 = vmul.f32 1.442695, %v1765_v53 }
 0xd77   :  { %v3735_v55 = vpop.eup %2888  ;;  %v1759_v22 = vpop.xlane.xlu0 %1758 }
 0xd78   :  { %2898 = vpow2.f32 %v1778_v10  ;;  %v1767_v56 = vsub.f32 %v1735_v33, %v1759_v22  ;;  %v1787_v58 = vsel %vm701_vm3, %v3735_v55, 0.0 }
 0xd79   :  { %v2891_v2 = vpop.eup %2890  ;;  %1788 = vadd.xlane.f32.xlu0 %v1787_v58 }
 0xd7a   :  { %v1782_v61 = vmul.f32 1.442695, %v1767_v56  ;;  %v1784_v14 = vsel %vm701_vm3, %v2891_v2, 0.0 }
 0xd7b   :  { %v1580_v0 = vpop.permute.xlu0 %1579  ;;  %1785 = vadd.xlane.f32.xlu1 %v1784_v14 }
 0xd7c   :  { %2900 = vpow2.f32 %v1782_v61  ;;  %2761 = vmatprep.subr.mxu1 %v1580_v0 }
 0xd7d   :  { %v3740_v27 = vpop.eup %2892  ;;  %2762 = vmatpush3.msra.mxu1 %v1580_v0 }
 0xd7e   :  { %2763 = vmatprep.subr.mxu1 %v1578_v5  ;;  %v1790_v44 = vsel %vm701_vm3, %v3740_v27, 0.0 }
 0xd7f   :  { %2764 = vmatpush3.msra.mxu1 %v1578_v5  ;;  %v1574_v31 = vpop.permute.xlu0 %1573  ;;  %1791 = vadd.xlane.f32.xlu1 %v1790_v44 }
 0xd80   :  { %2765 = vmatprep.subr.mxu1 %v1574_v31 }
 0xd81   :  { %v3744_v9 = vpop.eup %2894  ;;  %2766 = vmatpush3.msra.mxu1 %v1574_v31 }
 0xd82   :  { %v3746_v47 = vpop.eup %2896  ;;  %v1793_v12 = vsel %vm701_vm3, %v3744_v9, 0.0 }
 0xd83   :  { %1794 = vadd.xlane.f32.xlu0 %v1793_v12  ;;  %v1796_v11 = vsel %vm701_vm3, %v3746_v47, 0.0 }
 0xd84   :  { %1797 = vadd.xlane.f32.xlu1 %v1796_v11 }
 0xd85   :  { %v3752_v1 = vpop.eup %2898 }
 0xd86   :  { %v1799_v35 = vsel %vm701_vm3, %v3752_v1, 0.0 }
 0xd87   :  { %1800 = vadd.xlane.f32.xlu0 %v1799_v35 }
 0xd89   :  { %v3756_v54 = vpop.eup %2900 }
 0xd8a   :  { %v1805_v33 = vsel %vm701_vm3, %v3756_v54, 0.0 }
 0xd8b   :  { %1806 = vadd.xlane.f32.xlu1 %v1805_v33 }
 0xd9d   :  { %1567 = vrot.lane.b32.xlu0 %v3722_v13, %s3092_s14 }
 0xda4   :  { %v1756_v59 = vpop.xlane.xlu1 %1755 }
 0xda5   :  { %v1766_v18 = vsub.f32 %v3729_v21, %v1756_v59 }
 0xda7   :  { %v1780_v19 = vmul.f32 1.442695, %v1766_v18 }
 0xda8   :  { %v1572_v26 = vpop.permute.xlu1 %1571 }
 0xda9   :  { %2902 = vpow2.f32 %v1780_v19  ;;  %2767 = vmatprep.subr.mxu1 %v1572_v26 }
 0xdaa   :  { %2768 = vmatpush3.msra.mxu1 %v1572_v26 }
 0xdb6   :  { %v2903_v20 = vpop.eup %2902 }
 0xdb7   :  { %v1802_v39 = vsel %vm701_vm3, %v2903_v20, 0.0 }
 0xdb8   :  { %1803 = vadd.xlane.f32.xlu1 %v1802_v39 }
 0xdc9   :  { %1565 = vrot.lane.b32.xlu1 %v3717_v62, %s3092_s14 }
 0xe02   :  { %v1789_v25 = vpop.xlane.xlu0 %1788 }
 0xe04   :  { %v1786_v32 = vpop.xlane.xlu1 %1785 }
 0xe05   :  { %2904 = vrcp.f32 %v1786_v32 }
 0xe06   :  { %2906 = vrcp.f32 %v1789_v25 }
 0xe08   :  { %v1792_v48 = vpop.xlane.xlu1 %1791 }
 0xe09   :  { %2908 = vrcp.f32 %v1792_v48 }
 0xe0c   :  { %v1795_v40 = vpop.xlane.xlu0 %1794 }
 0xe0d   :  { %v1798_v60 = vpop.xlane.xlu1 %1797  ;;  %2910 = vrcp.f32 %v1795_v40 }
 0xe0e   :  { %2912 = vrcp.f32 %v1798_v60 }
 0xe10   :  { %v1801_v41 = vpop.xlane.xlu0 %1800 }
 0xe11   :  { %2914 = vrcp.f32 %v1801_v41 }
 0xe12   :  { %v2905_v17 = vpop.eup %2904 }
 0xe13   :  { %v1809_v46 = vmul.f32 %v2905_v17, %v2891_v2  ;;  %v2907_v3 = vpop.eup %2906 }
 0xe14   :  { %v1568_v21 = vpop.permute.xlu0 %1567  ;;  %v1807_v50 = vpop.xlane.xlu1 %1806  ;;  %v1811_v8 = vmul.f32 %v2907_v3, %v3735_v55 }
 0xe15   :  { %2769 = vmatprep.subr.mxu1 %v1568_v21  ;;  %2777 = vmatprep.mubr.msk.f32.mxu1 %vm701_vm3, %v1809_v46 }
 0xe16   :  { %2770 = vmatpush3.msra.mxu1 %v1568_v21  ;;  %v2909_v6 = vpop.eup %2908 }
 0xe17   :  { %v1813_v51 = vmul.f32 %v2909_v6, %v3740_v27 }
 0xe1a   :  { %v2911_v49 = vpop.eup %2910 }
 0xe1b   :  { %v2913_v53 = vpop.eup %2912 }
 0xe1c   :  { %v1817_v55 = vmul.f32 %v2913_v53, %v3746_v47 }
 0xe1e   :  { %v2915_v10 = vpop.eup %2914 }
 0xe41   :  { %v1804_v37 = vpop.xlane.xlu1 %1803 }
 0xe42   :  { %2916 = vrcp.f32 %v1804_v37 }
 0xe43   :  { %2918 = vrcp.f32 %v1807_v50 }
 0xe45   :  { %v1566_v15 = vpop.permute.xlu1 %1565 }
 0xe46   :  { %2771 = vmatprep.subr.mxu1 %v1566_v15 }
 0xe47   :  { %2772 = vmatpush3.msra.mxu1 %v1566_v15 }
 0xe48   :  { %2773 = vmatprep.subr.mxu1 %v3722_v13 }
 0xe49   :  { %2774 = vmatpush3.msra.mxu1 %v3722_v13  ;;  %v1815_v13 = vmul.f32 %v2911_v49, %v3744_v9 }
 0xe4a   :  { %2775 = vmatprep.subr.mxu1 %v3717_v62 }
 0xe4b   :  { %2776 = vmatpush3.msra.mxu1 %v3717_v62 }
 0xe4c   :  { %2778 = vmatmul.mubr.msk.f32.vlgmr.msra.gmra.mxu1 %vm701_vm3, %v1811_v8  ;;  %2789 = vmatprep.subr.mxu1 %v3433_v23 }
 0xe4d   :  { %2780 = vmatprep.mubr.msk.f32.mxu1 %vm701_vm3, %v1813_v51  ;;  %2790 = vmatpush3.msra.mxu1 %v3433_v23  ;;  %v1819_v23 = vmul.f32 %v2915_v10, %v3752_v1 }
 0xe4e   :  { %2791 = vmatprep.subr.mxu1 %v3435_v29 }
 0xe4f   :  { %2792 = vmatpush3.msra.mxu1 %v3435_v29  ;;  %v2917_v62 = vpop.eup %2916 }
 0xe50   :  { %2781 = vmatmul.mubr.msk.f32.gmra.mxu1 %vm701_vm3, %v1815_v13  ;;  %2793 = vmatprep.subr.mxu1 %v3441_v30  ;;  %v2919_v22 = vpop.eup %2918  ;;  %v1821_v56 = vmul.f32 %v2917_v62, %v2903_v20 }
 0xe51   :  { %2783 = vmatprep.mubr.msk.f32.mxu1 %vm701_vm3, %v1817_v55  ;;  %2794 = vmatpush3.msra.mxu1 %v3441_v30  ;;  %v1823_v29 = vmul.f32 %v2919_v22, %v3756_v54 }
 0xe52   :  { %2795 = vmatprep.subr.mxu1 %v3445_v36 }
 0xe53   :  { %2796 = vmatpush3.msra.mxu1 %v3445_v36 }
 0xe54   :  { %2784 = vmatmul.mubr.msk.f32.gmra.mxu1 %vm701_vm3, %v1819_v23  ;;  %2800 = vmatprep.subr.mxu1 %v3476_v42 }
 0xe55   :  { %2786 = vmatprep.mubr.msk.f32.mxu1 %vm701_vm3, %v1821_v56 }
 0xe58   :  { %2787 = vmatmul.mubr.msk.f32.gmra.mxu1 %vm701_vm3, %v1823_v29 }
 0xf0c   :  { %v2779_v58 = vpop.f32.mrf.mxu1 }
 0xf0e   :  { %v1914_v30 = vpop.f32.mrf.mxu1 }
 0xf10   :  { %v2782_v2 = vpop.f32.mrf.mxu1 }
 0xf11   :  { %1957 = vrot.lane.b32.xlu1 %v2782_v2, %s3085_s19 }
 0xf12   :  { %v1924_v61 = vpop.f32.mrf.mxu1 }
 0xf13   :  { %1955 = vrot.lane.b32.xlu0 %v1924_v61, %s3085_s19 }
 0xf14   :  { %v2785_v14 = vpop.f32.mrf.mxu1 }
 0xf15   :  { %1965 = vrot.lane.b32.xlu1 %v2785_v14, %s3093_s1 }
 0xf16   :  { %v1934_v36 = vpop.f32.mrf.mxu1 }
 0xf17   :  { %1963 = vrot.lane.b32.xlu0 %v1934_v36, %s3093_s1 }
 0xf18   :  { %v2788_v0 = vpop.f32.mrf.mxu1 }
 0xf19   :  { %1973 = vrot.lane.b32.xlu1 %v2788_v0, %s3094_s29 }
 0xf1a   :  { %v1944_v27 = vpop.f32.mrf.mxu1 }
 0xf1b   :  { %1971 = vrot.lane.b32.xlu0 %v1944_v27, %s3094_s29 }
 0xf83   :  { %v1958_v5 = vpop.permute.xlu1 %1957 }
 0xf84   :  { %v1978_v11 = vsel %vm547_vm2, %v2779_v58, %v1958_v5 }
 0xf85   :  { %v1956_v44 = vpop.permute.xlu0 %1955 }
 0xf86   :  { %v1977_v47 = vsel %vm547_vm2, %v1914_v30, %v1956_v44 }
 0xf87   :  { %v1966_v31 = vpop.permute.xlu1 %1965 }
 0xf88   :  { %v1980_v54 = vsel %vm173_vm0, %v1978_v11, %v1966_v31 }
 0xf89   :  { %v1964_v9 = vpop.permute.xlu0 %1963 }
 0xf8a   :  { %v1979_v1 = vsel %vm173_vm0, %v1977_v47, %v1964_v9 }
 0xf8b   :  { %v1974_v12 = vpop.permute.xlu1 %1973 }
 0xf8c   :  { %v1982_v59 = vsel %vm947_vm4, %v1980_v54, %v1974_v12 }
 0xf8d   :  { %v1972_v35 = vpop.permute.xlu0 %1971 }
 0xf8e   :  { %v1981_v33 = vsel %vm947_vm4, %v1979_v1, %v1972_v35 }
 0xf8f   :  { %2797 = vmatprep.mubr.msk.f32.mxu1 %vm259_vm1, %v1981_v33 }
 0xf90   :  { %2798 = vmatmul.mubr.msk.f32.vlgmr.msra.gmra.mxu1 %vm259_vm1, %v1982_v59 }
 0xf91   :  { %2801 = vmatpush3.msra.mxu1 %v3476_v42 }
 0xf92   :  { %2802 = vmatprep.subr.mxu1 %v3480_v16 }
 0xf93   :  { %2803 = vmatpush3.msra.mxu1 %v3480_v16 }
 0xf94   :  { %2804 = vmatprep.subr.mxu1 %v3482_v43 }
 0xf95   :  { %2805 = vmatpush3.msra.mxu1 %v3482_v43 }
 0xf96   :  { %2806 = vmatprep.subr.mxu1 %v3486_v45 }
 0xf97   :  { %2807 = vmatpush3.msra.mxu1 %v3486_v45 }
0x1050   :  { %v2799_v18 = vpop.f32.mrf.mxu1 }
0x1051   :  { %v2061_v19 = vadd.f32 %v2799_v18, %v3466_v52 }
0x1052   :  { %v2055_v26 = vpop.f32.mrf.mxu1 }
0x1053   :  { %v2056_v20 = vadd.f32 %v3466_v52, %v2055_v26  ;;  %v2065_v42 = vadd.f32 %v2061_v19, %v3625_v34 }
0x1055   :  { %v2069_v39 = vsel %vm259_vm1, %v2065_v42, 0.0  ;;  %v2064_v16 = vadd.f32 %v2056_v20, %v3622_v7 }
0x1056   :  { %2070 = vadd.xlane.f32.xlu1 %v2069_v39 }
0x1057   :  { %v2066_v32 = vsel %vm259_vm1, %v2064_v16, 0.0 }
0x1058   :  { %2067 = vadd.xlane.f32.xlu0 %v2066_v32 }
0x10df   :  { %v2071_v43 = vpop.xlane.xlu1 %2070 }
0x10e0   :  { %v2073_v25 = vmul.f32 0.03125, %v2071_v43 }
0x10e1   :  { %v2068_v40 = vpop.xlane.xlu0 %2067 }
0x10e2   :  { %v2072_v45 = vmul.f32 0.03125, %v2068_v40  ;;  %v2075_v41 = vsub.f32 %v2065_v42, %v2073_v25 }
0x10e4   :  { %v2074_v17 = vsub.f32 %v2064_v16, %v2072_v45  ;;  %v2077_v52 = vmul.f32 %v2075_v41, %v2075_v41 }
0x10e6   :  { %v2076_v46 = vmul.f32 %v2074_v17, %v2074_v17  ;;  %v2081_v34 = vsel %vm259_vm1, %v2077_v52, 0.0 }
0x10e8   :  { %v2078_v21 = vsel %vm259_vm1, %v2076_v46, 0.0 }
0x10e9   :  { %2079 = vadd.xlane.f32.xlu0 %v2078_v21 }
0x10ed   :  { %2082 = vadd.xlane.f32.xlu0 %v2081_v34 }
0x1172   :  { %v2080_v48 = vpop.xlane.xlu0 %2079 }
0x1173   :  { %v2084_v7 = vmul.f32 0.03125, %v2080_v48 }
0x1175   :  { %v2086_v60 = vadd.f32 1e-12, %v2084_v7 }
0x1176   :  { %v2083_v50 = vpop.xlane.xlu0 %2082 }
0x1177   :  { %2920 = vrsqrt.f32 %v2086_v60  ;;  %v2085_v37 = vmul.f32 0.03125, %v2083_v50 }
0x1179   :  { %v2087_v15 = vadd.f32 1e-12, %v2085_v37 }
0x117b   :  { %2922 = vrsqrt.f32 %v2087_v15 }
0x1184   :  { %v2921_v3 = vpop.eup %2920 }
0x1185   :  { %v2090_v6 = vmul.f32 %v2921_v3, %v2074_v17 }
0x1187   :  { %v2092_v8 = vmul.f32 %v3496_v57, %v2090_v6 }
0x1188   :  { %v2923_v49 = vpop.eup %2922 }
0x1189   :  { %v2091_v51 = vmul.f32 %v2923_v49, %v2075_v41  ;;  %v2094_v53 = vadd.f32 %v3501_v38, %v2092_v8 }
0x118b   :  { %2808 = vmatprep.mubr.msk.f32.mxu1 %vm259_vm1, %v2094_v53  ;;  %v2093_v13 = vmul.f32 %v3496_v57, %v2091_v51 }
0x118d   :  { %v2095_v10 = vadd.f32 %v3501_v38, %v2093_v13 }
0x118f   :  { %2809 = vmatmul.mubr.msk.f32.vlgmr.msra.gmra.mxu1 %vm259_vm1, %v2095_v10 }
0x124f   :  { %v2810_v55 = vpop.f32.mrf.mxu1 }
0x1250   :  { %v2174_v62 = vadd.f32 %v2810_v55, %v3583_v24 }
0x1251   :  { %v2168_v23 = vpop.f32.mrf.mxu1 }
0x1252   :  { %v2180_v22 = vmul.f32 0.044715, %v2174_v62  ;;  %v2169_v56 = vadd.f32 %v3583_v24, %v2168_v23  ;;  %v2178_v9 = vmul.f32 0.5, %v2174_v62 }
0x1254   :  { %v2182_v29 = vmul.f32 %v2180_v22, %v2174_v62  ;;  %v2179_v58 = vmul.f32 0.044715, %v2169_v56  ;;  %v2177_v44 = vmul.f32 0.5, %v2169_v56 }
0x1256   :  { %v2184_v30 = vmul.f32 %v2182_v29, %v2174_v62  ;;  %v2181_v2 = vmul.f32 %v2179_v58, %v2169_v56 }
0x1258   :  { %v2186_v61 = vadd.f32 %v2184_v30, %v2174_v62  ;;  %v2183_v14 = vmul.f32 %v2181_v2, %v2169_v56 }
0x125a   :  { %v2188_v36 = vmul.f32 0.7978846, %v2186_v61  ;;  %v2185_v0 = vadd.f32 %v2183_v14, %v2169_v56 }
0x125c   :  { %2924 = vtanh.f32 %v2188_v36  ;;  %v2187_v57 = vmul.f32 0.7978846, %v2185_v0 }
0x125e   :  { %2926 = vtanh.f32 %v2187_v57 }
0x1269   :  { %v2925_v38 = vpop.eup %2924 }
0x126a   :  { %v2192_v5 = vadd.f32 1.0, %v2925_v38 }
0x126b   :  { %v2927_v27 = vpop.eup %2926 }
0x126c   :  { %v2191_v31 = vadd.f32 1.0, %v2927_v27  ;;  %v2194_v12 = vmul.f32 %v2192_v5, %v2178_v9 }
0x126e   :  { %v2193_v47 = vmul.f32 %v2191_v31, %v2177_v44 }
0x1270   :  { %2827 = vmatprep.mubr.msk.f32.mxu0 %vm701_vm3, %v2193_v47 }
0x1271   :  { %2828 = vmatmul.mubr.msk.f32.vlgmr.msra.gmra.mxu0 %vm701_vm3, %v2194_v12 }
0x1331   :  { %v2829_v24 = vpop.f32.mrf.mxu0 }
0x1332   :  { %v2273_v11 = vadd.f32 %v2829_v24, %v3599_v4 }
0x1333   :  { %v2267_v1 = vpop.f32.mrf.mxu0 }
0x1334   :  { %v2268_v35 = vadd.f32 %v3599_v4, %v2267_v1  ;;  %v2277_v54 = vadd.f32 %v2273_v11, %v2095_v10 }
0x1336   :  { %v2281_v33 = vsel %vm259_vm1, %v2277_v54, 0.0  ;;  %v2276_v59 = vadd.f32 %v2268_v35, %v2094_v53 }
0x1337   :  { %2282 = vadd.xlane.f32.xlu0 %v2281_v33 }
0x1338   :  { %v2278_v18 = vsel %vm259_vm1, %v2276_v59, 0.0 }
0x1339   :  { %2279 = vadd.xlane.f32.xlu1 %v2278_v18 }
0x13c0   :  { %v2283_v19 = vpop.xlane.xlu0 %2282 }
0x13c1   :  { %v2285_v26 = vmul.f32 0.03125, %v2283_v19 }
0x13c2   :  { %v2280_v20 = vpop.xlane.xlu1 %2279 }
0x13c3   :  { %v2287_v42 = vsub.f32 %v2277_v54, %v2285_v26  ;;  %v2284_v39 = vmul.f32 0.03125, %v2280_v20 }
0x13c5   :  { %v2286_v16 = vsub.f32 %v2276_v59, %v2284_v39  ;;  %v2289_v32 = vmul.f32 %v2287_v42, %v2287_v42 }
0x13c7   :  { %v2293_v43 = vsel %vm259_vm1, %v2289_v32, 0.0  ;;  %v2288_v25 = vmul.f32 %v2286_v16, %v2286_v16 }
0x13c8   :  { %2294 = vadd.xlane.f32.xlu0 %v2293_v43 }
0x13c9   :  { %v2290_v4 = vsel %vm259_vm1, %v2288_v25, 0.0 }
0x13ca   :  { %2291 = vadd.xlane.f32.xlu1 %v2290_v4 }
0x1451   :  { %v2295_v40 = vpop.xlane.xlu0 %2294 }
0x1452   :  { %v2297_v45 = vmul.f32 0.03125, %v2295_v40 }
0x1453   :  { %v2292_v41 = vpop.xlane.xlu1 %2291 }
0x1454   :  { %v2299_v17 = vadd.f32 1e-12, %v2297_v45  ;;  %v2296_v46 = vmul.f32 0.03125, %v2292_v41 }
0x1456   :  { %2928 = vrsqrt.f32 %v2299_v17  ;;  %v2298_v21 = vadd.f32 1e-12, %v2296_v46 }
0x1458   :  { %2930 = vrsqrt.f32 %v2298_v21 }
0x1463   :  { %v2929_v52 = vpop.eup %2928 }
0x1464   :  { %v2303_v34 = vmul.f32 %v2929_v52, %v2287_v42 }
0x1465   :  { %v2931_v48 = vpop.eup %2930 }
0x1466   :  { %v2302_v7 = vmul.f32 %v2931_v48, %v2286_v16  ;;  %v2305_v60 = vmul.f32 %v3612_v63, %v2303_v34 }
0x1468   :  { %v2304_v50 = vmul.f32 %v3612_v63, %v2302_v7  ;;  %v2307_v37 = vadd.f32 %v3618_v28, %v2305_v60 }
0x146a   :  { %v2306_v15 = vadd.f32 %v3618_v28, %v2304_v50  ;;  %2309 = vst.msk [vmem:[#allocation13 + $0x8] sm:$0xff] %vm259_vm1, %v2307_v37 }
0x146c   :  { %2308 = vst.msk [vmem:[#allocation13] sm:$0xff] %vm259_vm1, %v2306_v15 }
0x146d   :  { %3063 = shalt.err (!%p3060_p6)
}
0x146e   :  { %2321 = dma.vmem_to_hbm [thread:$0]  %s2316_s12, 256, %s3860_s10, [#allocation4], %s3084_s18, %s3084_s18, %s3085_s19  }
0x146f   :  { %3080 = dma.done.wait [#allocation4], 256  }
0x1470   :  { %3081 = vsyncadd [#allocation4], 4294967040 }
0x1471   :  { %2325 = vsyncpa [#allocation3], 1 }
0x1472   :  { %2326 = vsyncpa [#allocation6], 1 }
0x1473   :  { %2327 = vsyncpa [#allocation9], 1 }
0x1474   :  { %2328 = vsyncpa [#allocation12], 1 }
0x1475   :  { %2329 = vsyncpa [#allocation4], 1 }

</bundles_post_ra>
